<compile_context>
chip_gen: v7x
topology: tpu7x:2x2x1
jax: 0.10.0
libtpu: 0.0.40
codegen_flags: <defaults>
</compile_context>

<pallas_src>
import functools
import math

import jax
import jax.numpy as jnp
import numpy as np
from jax import lax
from jax.experimental import pallas as pl
from jax.experimental.pallas import tpu as pltpu


_LN_EPS = 1e-5


@functools.lru_cache(maxsize=None)
def _vmem_limit_bytes():
    """64 MiB on v5e/v6e (128 MiB physical); ~75% of physical on v7x (64 MiB)."""
    default = 64 * 1024 * 1024
    try:
        info = pltpu.get_tpu_info()
        cap = getattr(info, "vmem_capacity_bytes", None)
        if cap:
            return int(min(default, cap * 3 // 4))
    except Exception:
        pass
    return default


def _pick_row_block(rows, feat):
    """Tile the q/MLP row axis only when the (8,128) layout constraint allows it
    and there are >= 2 tiles (keeps both v7x TensorCores busy)."""
    if feat % 128 == 0 and rows % 8 == 0:
        for cand in (1024, 512, 256, 128):
            if rows % cand == 0 and rows // cand >= 2:
                return cand
    return rows


def _pick_k_block(k_rows, feat):
    """K/V chunk size for the flash-style inner (grid) loop."""
    if feat % 128 == 0 and k_rows % 8 == 0:
        for cand in (1024, 512, 256):
            if k_rows % cand == 0 and k_rows // cand >= 2:
                return cand
    return k_rows


# ---------------------------------------------------------------------------
# Fused kernels
# ---------------------------------------------------------------------------

def _fused_attn_ln_kernel(qb_ref, qpe_ref, kb_ref, kpe_ref,
                          wq_ref, bq_ref, wk_ref, bk_ref, wv_ref, bv_ref,
                          wo_ref, bo_ref, g_ref, beta_ref,
                          o_ref,
                          qp_scr, acc_scr, m_scr, l_scr,
                          *, num_heads, head_dim, eps):
    """out = LayerNorm(q_base + Attention(q_base + q_pe, k_base + k_pe, k_base)).

    V == k_base (deduped DMA).  Wq/bq are pre-scaled by 1/sqrt(head_dim);
    weights arrive bf16; all softmax/LN math f32; MXU accumulates in f32.
    Grid = (batch, q-tile, k-chunk); k-chunk is an "arbitrary" online-softmax
    reduction axis with per-head (m, l, acc) scratch.
    """
    f32 = jnp.float32
    bf16 = jnp.bfloat16
    Dh = head_dim
    kk = pl.program_id(2)
    nkk = pl.num_programs(2)

    # ---- once per (batch, q-tile): project Q, init online-softmax stats -----
    @pl.when(kk == 0)
    def _():
        q_in = (qb_ref[...].astype(f32) + qpe_ref[...].astype(f32)).astype(bf16)
        qp_scr[...] = (jnp.dot(q_in, wq_ref[...], preferred_element_type=f32)
                       + bq_ref[...])
        m_scr[...] = jnp.full(m_scr.shape, -jnp.inf, f32)
        l_scr[...] = jnp.zeros(l_scr.shape, f32)
        acc_scr[...] = jnp.zeros(acc_scr.shape, f32)

    # ---- per K/V chunk: project K (PE-added) and V (raw k_base) -------------
    k_in = (kb_ref[...].astype(f32) + kpe_ref[...].astype(f32)).astype(bf16)
    v_in = kb_ref[...].astype(bf16)                    # V == k_base (no extra DMA)
    kp = jnp.dot(k_in, wk_ref[...], preferred_element_type=f32) + bk_ref[...]
    vp = jnp.dot(v_in, wv_ref[...], preferred_element_type=f32) + bv_ref[...]
    qp = qp_scr[...]

    # Per-head online-softmax accumulation (static unroll; scale folded in Wq).
    for h in range(num_heads):
        sl = slice(h * Dh, (h + 1) * Dh)
        qh = qp[:, sl].astype(bf16)                    # (rb, Dh)
        kh = kp[:, sl].astype(bf16)                    # (kc, Dh)
        vh = vp[:, sl].astype(bf16)                    # (kc, Dh)
        s = lax.dot_general(qh, kh, (((1,), (1,)), ((), ())),
                            preferred_element_type=f32)        # (rb, kc)
        m_prev = m_scr[h]                              # (rb, 1)
        m_new = jnp.maximum(m_prev, jnp.max(s, axis=-1, keepdims=True))
        alpha = jnp.exp(m_prev - m_new)                # (rb, 1), f32 EUP
        p = jnp.exp(s - m_new)                         # f32
        l_scr[h] = alpha * l_scr[h] + jnp.sum(p, axis=-1, keepdims=True)
        acc_scr[h] = alpha * acc_scr[h] + jnp.dot(p.astype(bf16), vh,
                                                  preferred_element_type=f32)
        m_scr[h] = m_new

    # ---- last chunk: normalize, ONE wide out-proj, residual + LayerNorm -----
    @pl.when(kk == nkk - 1)
    def _():
        o_heads = [acc_scr[h] * pl.reciprocal(l_scr[h], approx=True)
                   for h in range(num_heads)]
        o_cat = jnp.concatenate(o_heads, axis=-1).astype(bf16)    # (rb, Di)
        y = jnp.dot(o_cat, wo_ref[...], preferred_element_type=f32) + bo_ref[...]
        r = qb_ref[...].astype(f32) + y
        mu = jnp.mean(r, axis=-1, keepdims=True)
        var = jnp.mean((r - mu) * (r - mu), axis=-1, keepdims=True)
        rn = (r - mu) * lax.rsqrt(var + eps)
        o_ref[...] = (rn * g_ref[...] + beta_ref[...]).astype(o_ref.dtype)


def _fused_mlp_ln_kernel(x_ref, w1_ref, b1_ref, w2_ref, b2_ref,
                         g_ref, beta_ref, o_ref, *, eps):
    """out = LayerNorm(x + Linear2(ReLU(Linear1(x))))."""
    f32 = jnp.float32
    bf16 = jnp.bfloat16
    x = x_ref[...].astype(f32)                                     # (R, E)
    h = jnp.dot(x.astype(bf16), w1_ref[...], preferred_element_type=f32) + b1_ref[...]
    h = jnp.maximum(h, 0.0)                                        # ReLU (f32)
    y = jnp.dot(h.astype(bf16), w2_ref[...], preferred_element_type=f32) + b2_ref[...]
    r = x + y
    mu = jnp.mean(r, axis=-1, keepdims=True)
    var = jnp.mean((r - mu) * (r - mu), axis=-1, keepdims=True)
    rn = (r - mu) * lax.rsqrt(var + eps)
    o_ref[...] = (rn * g_ref[...] + beta_ref[...]).astype(o_ref.dtype)


# ---------------------------------------------------------------------------
# pallas_call wrappers
# ---------------------------------------------------------------------------

def fused_attention_ln(q_base, q_pe, k_base, k_pe, ap, lp, num_heads):
    """One pallas_call: PE-adds + multi-head attention (V == k_base) + residual
    + LayerNorm, with q-row tiling and flash-style K/V chunking."""
    B, Rq, E = q_base.shape
    _, Rk, _ = k_base.shape
    Di = ap["wq"].shape[1]
    Dh = Di // num_heads
    rb = _pick_row_block(Rq, E)          # query-row tiling ("parallel", v7x megacore)
    kc = _pick_k_block(Rk, E)            # K/V chunk ("arbitrary" reduction axis)
    grid = (B, Rq // rb, Rk // kc)

    kernel = functools.partial(_fused_attn_ln_kernel,
                               num_heads=num_heads, head_dim=Dh, eps=_LN_EPS)

    qmap = lambda b, r, c: (b, r, 0)
    kmap = lambda b, r, c: (b, c, 0)
    wmap = lambda b, r, c: (0, 0)

    return pl.pallas_call(
        kernel,
        out_shape=jax.ShapeDtypeStruct((B, Rq, E), q_base.dtype),
        grid=grid,
        in_specs=[
            pl.BlockSpec((None, rb, E), qmap),    # q_base (residual rows)
            pl.BlockSpec((None, rb, E), qmap),    # q_pe
            pl.BlockSpec((None, kc, E), kmap),    # k_base (also used as V)
            pl.BlockSpec((None, kc, E), kmap),    # k_pe
            pl.BlockSpec((E, Di), wmap),          # wq (bf16, 1/sqrt(Dh) folded)
            pl.BlockSpec((1, Di), wmap),          # bq (f32, pre-scaled)
            pl.BlockSpec((E, Di), wmap),          # wk
            pl.BlockSpec((1, Di), wmap),          # bk
            pl.BlockSpec((E, Di), wmap),          # wv
            pl.BlockSpec((1, Di), wmap),          # bv
            pl.BlockSpec((Di, E), wmap),          # wo
            pl.BlockSpec((1, E), wmap),           # bo
            pl.BlockSpec((1, E), wmap),           # LN gamma
            pl.BlockSpec((1, E), wmap),           # LN beta
        ],
        out_specs=pl.BlockSpec((None, rb, E), qmap),
        scratch_shapes=[
            pltpu.VMEM((rb, Di), jnp.float32),              # projected Q (per q-tile)
            pltpu.VMEM((num_heads, rb, Dh), jnp.float32),   # per-head numerator acc
            pltpu.VMEM((num_heads, rb, 1), jnp.float32),    # per-head running max
            pltpu.VMEM((num_heads, rb, 1), jnp.float32),    # per-head running denom
        ],
        compiler_params=pltpu.CompilerParams(
            dimension_semantics=("parallel", "parallel", "arbitrary"),
            vmem_limit_bytes=_vmem_limit_bytes()),
    )(q_base, q_pe, k_base, k_pe,
      ap["wq"], ap["bq"], ap["wk"], ap["bk"], ap["wv"], ap["bv"],
      ap["wo"], ap["bo"], lp["gamma"], lp["beta"])


def fused_mlp_ln(x, mp, lp):
    """One pallas_call: MLP + residual + LayerNorm, rows flattened to (B*N, E)."""
    B, N, E = x.shape
    Dm = mp["w1"].shape[1]
    rows = B * N
    x2 = x.reshape(rows, E)                      # lane/sublane-dense 2-D slab
    rb = _pick_row_block(rows, E)

    kernel = functools.partial(_fused_mlp_ln_kernel, eps=_LN_EPS)
    rmap = lambda r: (r, 0)
    wmap = lambda r: (0, 0)

    y2 = pl.pallas_call(
        kernel,
        out_shape=jax.ShapeDtypeStruct((rows, E), x.dtype),
        grid=(rows // rb,),
        in_specs=[
            pl.BlockSpec((rb, E), rmap),
            pl.BlockSpec((E, Dm), wmap),         # w1 (bf16)
            pl.BlockSpec((1, Dm), wmap),         # b1
            pl.BlockSpec((Dm, E), wmap),         # w2 (bf16)
            pl.BlockSpec((1, E), wmap),          # b2
            pl.BlockSpec((1, E), wmap),          # LN gamma
            pl.BlockSpec((1, E), wmap),          # LN beta
        ],
        out_specs=pl.BlockSpec((rb, E), rmap),
        compiler_params=pltpu.CompilerParams(
            dimension_semantics=("parallel",),
            vmem_limit_bytes=_vmem_limit_bytes()),
    )(x2, mp["w1"], mp["b1"], mp["w2"], mp["b2"], lp["gamma"], lp["beta"])
    return y2.reshape(B, N, E)


# ---------------------------------------------------------------------------
# Parameter preparation (scale folding + bf16 weight cast, done once)
# ---------------------------------------------------------------------------

def prepare_params(params, num_heads):
    def prep_attn(p):
        Di = p["wq"].shape[1]
        scale = 1.0 / math.sqrt(Di // num_heads)
        return dict(
            wq=(p["wq"] * scale).astype(jnp.bfloat16), bq=p["bq"] * scale,
            wk=p["wk"].astype(jnp.bfloat16), bk=p["bk"],
            wv=p["wv"].astype(jnp.bfloat16), bv=p["bv"],
            wo=p["wo"].astype(jnp.bfloat16), bo=p["bo"])

    def prep_mlp(p):
        return dict(w1=p["w1"].astype(jnp.bfloat16), b1=p["b1"],
                    w2=p["w2"].astype(jnp.bfloat16), b2=p["b2"])

    out = dict(params)
    out["self_attn"] = prep_attn(params["self_attn"])
    out["cross_t2i"] = prep_attn(params["cross_t2i"])
    out["cross_i2t"] = prep_attn(params["cross_i2t"])
    out["mlp"] = prep_mlp(params["mlp"])
    return out


# ---------------------------------------------------------------------------
# TwoWayAttentionBlock forward (quant=False, skip_first_layer_pe=False)
# ---------------------------------------------------------------------------

def two_way_attention_block(queries, keys, query_pe, key_pe, prepared, num_heads):
    # Large image-token slabs live in HBM as bf16 (they are read by two stages
    # and always cast to bf16 at the MXU anyway); in-kernel math stays f32.
    keys_s = keys.astype(jnp.bfloat16)
    key_pe_s = key_pe.astype(jnp.bfloat16)

    # (1) self-attention of sparse inputs: q = k = queries + pe, v = queries (== k_base)
    queries = fused_attention_ln(queries, query_pe, queries, query_pe,
                                 prepared["self_attn"], prepared["norm1"], num_heads)
    # (2) cross-attention tokens -> image: v = keys (== k_base), K/V chunked
    queries = fused_attention_ln(queries, query_pe, keys_s, key_pe_s,
                                 prepared["cross_t2i"], prepared["norm2"], num_heads)
    # (3) MLP on sparse inputs + add + LN
    queries = fused_mlp_ln(queries, prepared["mlp"], prepared["norm3"])
    # (4) cross-attention image -> tokens: q = keys + pe, k = queries + pe, v = queries (== k_base)
    keys_out = fused_attention_ln(keys_s, key_pe_s, queries, query_pe,
                                  prepared["cross_i2t"], prepared["norm4"], num_heads)
    return queries, keys_out


# ---------------------------------------------------------------------------
# Parameter init (deterministic, synthetic)
# ---------------------------------------------------------------------------

def _linear(key, fan_in, fan_out):
    kw, kb = jax.random.split(key)
    w = jax.random.normal(kw, (fan_in, fan_out), jnp.float32) * 0.05
    b = jax.random.normal(kb, (1, fan_out), jnp.float32) * 0.05
    return w, b


def _attn_params(key, E, internal_dim):
    ks = jax.random.split(key, 4)
    wq, bq = _linear(ks[0], E, internal_dim)
    wk, bk = _linear(ks[1], E, internal_dim)
    wv, bv = _linear(ks[2], E, internal_dim)
    wo, bo = _linear(ks[3], internal_dim, E)
    return dict(wq=wq, bq=bq, wk=wk, bk=bk, wv=wv, bv=bv, wo=wo, bo=bo)


def _ln_params(key, E):
    kg, kb = jax.random.split(key)
    return dict(gamma=1.0 + 0.1 * jax.random.normal(kg, (1, E), jnp.float32),
                beta=0.1 * jax.random.normal(kb, (1, E), jnp.float32))


def init_params(key, E, mlp_dim, downsample_rate):
    ks = jax.random.split(key, 8)
    w1, b1 = _linear(ks[4], E, mlp_dim)
    w2, b2 = _linear(ks[5], mlp_dim, E)
    return dict(
        self_attn=_attn_params(ks[0], E, E),                   # downsample_rate=1
        cross_t2i=_attn_params(ks[1], E, E // downsample_rate),
        cross_i2t=_attn_params(ks[2], E, E // downsample_rate),
        mlp=dict(w1=w1, b1=b1, w2=w2, b2=b2),
        norm1=_ln_params(ks[3], E),
        norm2=_ln_params(ks[6], E),
        norm3=_ln_params(ks[7], E),
        norm4=_ln_params(jax.random.fold_in(key, 99), E),
    )


# ---------------------------------------------------------------------------
# Pure-JAX f32 reference (for correctness check)
# ---------------------------------------------------------------------------

def _ref_attention(q, k, v, p, num_heads):
    qp = q @ p["wq"] + p["bq"]
    kp = k @ p["wk"] + p["bk"]
    vp = v @ p["wv"] + p["bv"]
    B, Nq, Di = qp.shape
    Dh = Di // num_heads
    qh = qp.reshape(B, Nq, num_heads, Dh).transpose(0, 2, 1, 3)
    kh = kp.reshape(B, -1, num_heads, Dh).transpose(0, 2, 1, 3)
    vh = vp.reshape(B, -1, num_heads, Dh).transpose(0, 2, 1, 3)
    s = jnp.einsum("bhnd,bhmd->bhnm", qh, kh) / math.sqrt(Dh)
    a = jax.nn.softmax(s, axis=-1)
    o = jnp.einsum("bhnm,bhmd->bhnd", a, vh)
    o = o.transpose(0, 2, 1, 3).reshape(B, Nq, Di)
    return o @ p["wo"] + p["bo"]


def _ref_ln(x, p, eps=_LN_EPS):
    mu = jnp.mean(x, axis=-1, keepdims=True)
    var = jnp.mean((x - mu) ** 2, axis=-1, keepdims=True)
    return (x - mu) * jax.lax.rsqrt(var + eps) * p["gamma"] + p["beta"]


def _ref_mlp(x, p):
    return jnp.maximum(x @ p["w1"] + p["b1"], 0.0) @ p["w2"] + p["b2"]


def _ref_block(queries, keys, query_pe, key_pe, params, num_heads):
    q = queries + query_pe
    queries = _ref_ln(queries + _ref_attention(q, q, queries, params["self_attn"], num_heads),
                      params["norm1"])
    q = queries + query_pe
    k = keys + key_pe
    queries = _ref_ln(queries + _ref_attention(q, k, keys, params["cross_t2i"], num_heads),
                      params["norm2"])
    queries = _ref_ln(queries + _ref_mlp(queries, params["mlp"]), params["norm3"])
    q = queries + query_pe
    k = keys + key_pe
    keys = _ref_ln(keys + _ref_attention(k, q, queries, params["cross_i2t"], num_heads),
                   params["norm4"])
    return queries, keys


# ---------------------------------------------------------------------------
# Main
# ---------------------------------------------------------------------------

if __name__ == "__main__":
    B, Nq, Nk = 2, 8, 16          # sparse tokens / dense (image) tokens
    E, H, MLP_DIM, DSR = 32, 4, 64, 2

    key = jax.random.PRNGKey(0)
    k_q, k_k, k_qpe, k_kpe, k_p = jax.random.split(key, 5)
    queries = jax.random.normal(k_q, (B, Nq, E), jnp.float32)
    keys = jax.random.normal(k_k, (B, Nk, E), jnp.float32)
    query_pe = jax.random.normal(k_qpe, (B, Nq, E), jnp.float32)
    key_pe = jax.random.normal(k_kpe, (B, Nk, E), jnp.float32)

    params = init_params(k_p, E, MLP_DIM, DSR)
    prepared = prepare_params(params, H)          # scale folding + bf16 weights

    out_q, out_k = two_way_attention_block(queries, keys, query_pe, key_pe, prepared, H)
    jax.block_until_ready((out_q, out_k))

    # f32 reference; kernels use bf16 MXU operands, bf16 image slabs and an
    # approx reciprocal, so compare with a correspondingly relaxed tolerance.
    ref_q, ref_k = _ref_block(queries, keys, query_pe, key_pe, params, H)
    out_q_f = np.asarray(out_q.astype(jnp.float32))
    out_k_f = np.asarray(out_k.astype(jnp.float32))
    np.testing.assert_allclose(out_q_f, np.asarray(ref_q), rtol=2e-2, atol=2e-2)
    np.testing.assert_allclose(out_k_f, np.asarray(ref_k), rtol=2e-2, atol=2e-2)

    print("KERNEL_OK")
</pallas_src>

<mosaic_0001>
module attributes {stable_mosaic.version = 11 : i64} {
  func.func @_fused_attn_ln_kernel(%arg0: i32, %arg1: i32, %arg2: i32, %arg3: memref<1x8x32xf32, #tpu.memory_space<vmem>>, %arg4: memref<1x8x32xf32, #tpu.memory_space<vmem>>, %arg5: memref<1x8x32xf32, #tpu.memory_space<vmem>>, %arg6: memref<1x8x32xf32, #tpu.memory_space<vmem>>, %arg7: memref<32x32xbf16, #tpu.memory_space<vmem>>, %arg8: memref<1x32xf32, #tpu.memory_space<vmem>>, %arg9: memref<32x32xbf16, #tpu.memory_space<vmem>>, %arg10: memref<1x32xf32, #tpu.memory_space<vmem>>, %arg11: memref<32x32xbf16, #tpu.memory_space<vmem>>, %arg12: memref<1x32xf32, #tpu.memory_space<vmem>>, %arg13: memref<32x32xbf16, #tpu.memory_space<vmem>>, %arg14: memref<1x32xf32, #tpu.memory_space<vmem>>, %arg15: memref<1x32xf32, #tpu.memory_space<vmem>>, %arg16: memref<1x32xf32, #tpu.memory_space<vmem>>, %arg17: memref<1x8x32xf32, #tpu.memory_space<vmem>>, %arg18: memref<8x32xf32, #tpu.memory_space<vmem>>, %arg19: memref<4x8x8xf32, #tpu.memory_space<vmem>>, %arg20: memref<4x8x1xf32, #tpu.memory_space<vmem>>, %arg21: memref<4x8x1xf32, #tpu.memory_space<vmem>>) attributes {dimension_semantics = [#tpu.dimension_semantics<parallel>, #tpu.dimension_semantics<parallel>, #tpu.dimension_semantics<arbitrary>], iteration_bounds = array<i64: 2, 1, 1>, scalar_prefetch = 0 : i64, scratch_operands = 4 : i64, tpu.core_type = #tpu.core_type<tc>, window_params = [{transform_indices = @transform_0, window_bounds = array<i64: 1, 8, 32>}, {transform_indices = @transform_1, window_bounds = array<i64: 1, 8, 32>}, {transform_indices = @transform_2, window_bounds = array<i64: 1, 8, 32>}, {transform_indices = @transform_3, window_bounds = array<i64: 1, 8, 32>}, {pipeline_mode = #tpu.pipeline_mode<synchronous>, transform_indices = @transform_4, window_bounds = array<i64: 32, 32>}, {pipeline_mode = #tpu.pipeline_mode<synchronous>, transform_indices = @transform_5, window_bounds = array<i64: 1, 32>}, {pipeline_mode = #tpu.pipeline_mode<synchronous>, transform_indices = @transform_6, window_bounds = array<i64: 32, 32>}, {pipeline_mode = #tpu.pipeline_mode<synchronous>, transform_indices = @transform_7, window_bounds = array<i64: 1, 32>}, {pipeline_mode = #tpu.pipeline_mode<synchronous>, transform_indices = @transform_8, window_bounds = array<i64: 32, 32>}, {pipeline_mode = #tpu.pipeline_mode<synchronous>, transform_indices = @transform_9, window_bounds = array<i64: 1, 32>}, {pipeline_mode = #tpu.pipeline_mode<synchronous>, transform_indices = @transform_10, window_bounds = array<i64: 32, 32>}, {pipeline_mode = #tpu.pipeline_mode<synchronous>, transform_indices = @transform_11, window_bounds = array<i64: 1, 32>}, {pipeline_mode = #tpu.pipeline_mode<synchronous>, transform_indices = @transform_12, window_bounds = array<i64: 1, 32>}, {pipeline_mode = #tpu.pipeline_mode<synchronous>, transform_indices = @transform_13, window_bounds = array<i64: 1, 32>}, {transform_indices = @transform_14, window_bounds = array<i64: 1, 8, 32>}]} {
    %c0_i32 = arith.constant 0 : i32
    %0 = arith.cmpi eq, %arg2, %c0_i32 : i32
    %1 = arith.extui %0 : i1 to i32
    %c0_i32_0 = arith.constant 0 : i32
    %2 = arith.cmpi ne, %1, %c0_i32_0 : i32
    scf.if %2 {
      %c0_107 = arith.constant 0 : index
      %c0_108 = arith.constant 0 : index
      %c0_109 = arith.constant 0 : index
      %182 = vector.load %arg3[%c0_107, %c0_108, %c0_109] : memref<1x8x32xf32, #tpu.memory_space<vmem>>, vector<1x8x32xf32>
      %183 = vector.shape_cast %182 : vector<1x8x32xf32> to vector<8x32xf32>
      %c0_110 = arith.constant 0 : index
      %c0_111 = arith.constant 0 : index
      %c0_112 = arith.constant 0 : index
      %184 = vector.load %arg4[%c0_110, %c0_111, %c0_112] : memref<1x8x32xf32, #tpu.memory_space<vmem>>, vector<1x8x32xf32>
      %185 = vector.shape_cast %184 : vector<1x8x32xf32> to vector<8x32xf32>
      %186 = arith.addf %183, %185 : vector<8x32xf32>
      %187 = arith.truncf %186 : vector<8x32xf32> to vector<8x32xbf16>
      %c0_113 = arith.constant 0 : index
      %c0_114 = arith.constant 0 : index
      %188 = vector.load %arg7[%c0_113, %c0_114] : memref<32x32xbf16, #tpu.memory_space<vmem>>, vector<32x32xbf16>
      %cst_115 = arith.constant dense<0.000000e+00> : vector<8x32xf32>
      %189 = tpu.matmul %187, %188, %cst_115 {dimension_numbers = #tpu.dot_dimension_numbers<[1], [0], [0], [1], [0, 0, 1, 1], [], []>} : vector<8x32xbf16>, vector<32x32xbf16>, vector<8x32xf32> -> vector<8x32xf32>
      %c0_116 = arith.constant 0 : index
      %c0_117 = arith.constant 0 : index
      %190 = vector.load %arg8[%c0_116, %c0_117] : memref<1x32xf32, #tpu.memory_space<vmem>>, vector<1x32xf32>
      %191 = vector.broadcast %190 : vector<1x32xf32> to vector<8x32xf32>
      %192 = arith.addf %189, %191 : vector<8x32xf32>
      %c0_118 = arith.constant 0 : index
      %c0_119 = arith.constant 0 : index
      %193 = vector.load %arg18[%c0_118, %c0_119] : memref<8x32xf32, #tpu.memory_space<vmem>>, vector<8x32xf32>
      tpu.vector_store %arg18[%c0_118, %c0_119], %192 {strides = array<i32>} : memref<8x32xf32, #tpu.memory_space<vmem>>, vector<8x32xf32>,
      %cst_120 = arith.constant 0xFF800000 : f32
      %194 = vector.broadcast %cst_120 : f32 to vector<4x8x1xf32>
      %c0_121 = arith.constant 0 : index
      %c0_122 = arith.constant 0 : index
      %c0_123 = arith.constant 0 : index
      %195 = vector.load %arg20[%c0_121, %c0_122, %c0_123] : memref<4x8x1xf32, #tpu.memory_space<vmem>>, vector<4x8x1xf32>
      tpu.vector_store %arg20[%c0_121, %c0_122, %c0_123], %194 {strides = array<i32>} : memref<4x8x1xf32, #tpu.memory_space<vmem>>, vector<4x8x1xf32>,
      %cst_124 = arith.constant 0.000000e+00 : f32
      %196 = vector.broadcast %cst_124 : f32 to vector<4x8x1xf32>
      %c0_125 = arith.constant 0 : index
      %c0_126 = arith.constant 0 : index
      %c0_127 = arith.constant 0 : index
      %197 = vector.load %arg21[%c0_125, %c0_126, %c0_127] : memref<4x8x1xf32, #tpu.memory_space<vmem>>, vector<4x8x1xf32>
      tpu.vector_store %arg21[%c0_125, %c0_126, %c0_127], %196 {strides = array<i32>} : memref<4x8x1xf32, #tpu.memory_space<vmem>>, vector<4x8x1xf32>,
      %cst_128 = arith.constant 0.000000e+00 : f32
      %198 = vector.broadcast %cst_128 : f32 to vector<4x8x8xf32>
      %c0_129 = arith.constant 0 : index
      %c0_130 = arith.constant 0 : index
      %c0_131 = arith.constant 0 : index
      %199 = vector.load %arg19[%c0_129, %c0_130, %c0_131] : memref<4x8x8xf32, #tpu.memory_space<vmem>>, vector<4x8x8xf32>
      tpu.vector_store %arg19[%c0_129, %c0_130, %c0_131], %198 {strides = array<i32>} : memref<4x8x8xf32, #tpu.memory_space<vmem>>, vector<4x8x8xf32>,
    } else {
    }
    %c0 = arith.constant 0 : index
    %c0_1 = arith.constant 0 : index
    %c0_2 = arith.constant 0 : index
    %3 = vector.load %arg5[%c0, %c0_1, %c0_2] : memref<1x8x32xf32, #tpu.memory_space<vmem>>, vector<1x8x32xf32>
    %4 = vector.shape_cast %3 : vector<1x8x32xf32> to vector<8x32xf32>
    %c0_3 = arith.constant 0 : index
    %c0_4 = arith.constant 0 : index
    %c0_5 = arith.constant 0 : index
    %5 = vector.load %arg6[%c0_3, %c0_4, %c0_5] : memref<1x8x32xf32, #tpu.memory_space<vmem>>, vector<1x8x32xf32>
    %6 = vector.shape_cast %5 : vector<1x8x32xf32> to vector<8x32xf32>
    %7 = arith.addf %4, %6 : vector<8x32xf32>
    %8 = arith.truncf %7 : vector<8x32xf32> to vector<8x32xbf16>
    %c0_6 = arith.constant 0 : index
    %c0_7 = arith.constant 0 : index
    %c0_8 = arith.constant 0 : index
    %9 = vector.load %arg5[%c0_6, %c0_7, %c0_8] : memref<1x8x32xf32, #tpu.memory_space<vmem>>, vector<1x8x32xf32>
    %10 = vector.shape_cast %9 : vector<1x8x32xf32> to vector<8x32xf32>
    %11 = arith.truncf %10 : vector<8x32xf32> to vector<8x32xbf16>
    %c0_9 = arith.constant 0 : index
    %c0_10 = arith.constant 0 : index
    %12 = vector.load %arg9[%c0_9, %c0_10] : memref<32x32xbf16, #tpu.memory_space<vmem>>, vector<32x32xbf16>
    %cst = arith.constant dense<0.000000e+00> : vector<8x32xf32>
    %13 = tpu.matmul %8, %12, %cst {dimension_numbers = #tpu.dot_dimension_numbers<[1], [0], [0], [1], [0, 0, 1, 1], [], []>} : vector<8x32xbf16>, vector<32x32xbf16>, vector<8x32xf32> -> vector<8x32xf32>
    %c0_11 = arith.constant 0 : index
    %c0_12 = arith.constant 0 : index
    %14 = vector.load %arg10[%c0_11, %c0_12] : memref<1x32xf32, #tpu.memory_space<vmem>>, vector<1x32xf32>
    %15 = vector.broadcast %14 : vector<1x32xf32> to vector<8x32xf32>
    %16 = arith.addf %13, %15 : vector<8x32xf32>
    %c0_13 = arith.constant 0 : index
    %c0_14 = arith.constant 0 : index
    %17 = vector.load %arg11[%c0_13, %c0_14] : memref<32x32xbf16, #tpu.memory_space<vmem>>, vector<32x32xbf16>
    %cst_15 = arith.constant dense<0.000000e+00> : vector<8x32xf32>
    %18 = tpu.matmul %11, %17, %cst_15 {dimension_numbers = #tpu.dot_dimension_numbers<[1], [0], [0], [1], [0, 0, 1, 1], [], []>} : vector<8x32xbf16>, vector<32x32xbf16>, vector<8x32xf32> -> vector<8x32xf32>
    %c0_16 = arith.constant 0 : index
    %c0_17 = arith.constant 0 : index
    %19 = vector.load %arg12[%c0_16, %c0_17] : memref<1x32xf32, #tpu.memory_space<vmem>>, vector<1x32xf32>
    %20 = vector.broadcast %19 : vector<1x32xf32> to vector<8x32xf32>
    %21 = arith.addf %18, %20 : vector<8x32xf32>
    %c0_18 = arith.constant 0 : index
    %c0_19 = arith.constant 0 : index
    %22 = vector.load %arg18[%c0_18, %c0_19] : memref<8x32xf32, #tpu.memory_space<vmem>>, vector<8x32xf32>
    %23 = vector.extract_strided_slice %22 {offsets = [0, 0], sizes = [8, 8], strides = [1, 1]} : vector<8x32xf32> to vector<8x8xf32>
    %24 = arith.truncf %23 : vector<8x8xf32> to vector<8x8xbf16>
    %25 = vector.extract_strided_slice %16 {offsets = [0, 0], sizes = [8, 8], strides = [1, 1]} : vector<8x32xf32> to vector<8x8xf32>
    %26 = arith.truncf %25 : vector<8x8xf32> to vector<8x8xbf16>
    %27 = vector.extract_strided_slice %21 {offsets = [0, 0], sizes = [8, 8], strides = [1, 1]} : vector<8x32xf32> to vector<8x8xf32>
    %28 = arith.truncf %27 : vector<8x8xf32> to vector<8x8xbf16>
    %cst_20 = arith.constant dense<0.000000e+00> : vector<8x8xf32>
    %29 = tpu.matmul %24, %26, %cst_20 {dimension_numbers = #tpu.dot_dimension_numbers<[1], [1], [0], [0], [0, 0, 1, 0], [], []>} : vector<8x8xbf16>, vector<8x8xbf16>, vector<8x8xf32> -> vector<8x8xf32>
    %c0_21 = arith.constant 0 : index
    %c0_22 = arith.constant 0 : index
    %c0_23 = arith.constant 0 : index
    %30 = vector.load %arg20[%c0_21, %c0_22, %c0_23] : memref<4x8x1xf32, #tpu.memory_space<vmem>>, vector<1x8x1xf32>
    %31 = vector.shape_cast %30 : vector<1x8x1xf32> to vector<8x1xf32>
    %cst_24 = arith.constant dense<0xFF800000> : vector<8xf32>
    %32 = vector.multi_reduction <maximumf>, %29, %cst_24 [1] : vector<8x8xf32> to vector<8xf32>
    %33 = vector.shape_cast %32 : vector<8xf32> to vector<8x1xf32>
    %34 = arith.maximumf %31, %33 : vector<8x1xf32>
    %35 = arith.subf %31, %34 : vector<8x1xf32>
    %36 = math.exp %35 : vector<8x1xf32>
    %37 = vector.broadcast %34 : vector<8x1xf32> to vector<8x8xf32>
    %38 = arith.subf %29, %37 : vector<8x8xf32>
    %39 = math.exp %38 : vector<8x8xf32>
    %c0_25 = arith.constant 0 : index
    %c0_26 = arith.constant 0 : index
    %c0_27 = arith.constant 0 : index
    %40 = vector.load %arg21[%c0_25, %c0_26, %c0_27] : memref<4x8x1xf32, #tpu.memory_space<vmem>>, vector<1x8x1xf32>
    %41 = vector.shape_cast %40 : vector<1x8x1xf32> to vector<8x1xf32>
    %42 = arith.mulf %36, %41 : vector<8x1xf32>
    %cst_28 = arith.constant dense<0.000000e+00> : vector<8xf32>
    %43 = vector.multi_reduction <add>, %39, %cst_28 [1] : vector<8x8xf32> to vector<8xf32>
    %44 = vector.shape_cast %43 : vector<8xf32> to vector<8x1xf32>
    %45 = arith.addf %42, %44 : vector<8x1xf32>
    %c0_29 = arith.constant 0 : index
    %c0_30 = arith.constant 0 : index
    %c0_31 = arith.constant 0 : index
    %46 = vector.load %arg21[%c0_29, %c0_30, %c0_31] : memref<4x8x1xf32, #tpu.memory_space<vmem>>, vector<1x8x1xf32>
    %47 = vector.shape_cast %46 : vector<1x8x1xf32> to vector<8x1xf32>
    %48 = vector.shape_cast %45 : vector<8x1xf32> to vector<1x8x1xf32>
    tpu.vector_store %arg21[%c0_29, %c0_30, %c0_31], %48 {strides = array<i32>} : memref<4x8x1xf32, #tpu.memory_space<vmem>>, vector<1x8x1xf32>,
    %c0_32 = arith.constant 0 : index
    %c0_33 = arith.constant 0 : index
    %c0_34 = arith.constant 0 : index
    %49 = vector.load %arg19[%c0_32, %c0_33, %c0_34] : memref<4x8x8xf32, #tpu.memory_space<vmem>>, vector<1x8x8xf32>
    %50 = vector.shape_cast %49 : vector<1x8x8xf32> to vector<8x8xf32>
    %51 = vector.broadcast %36 : vector<8x1xf32> to vector<8x8xf32>
    %52 = arith.mulf %51, %50 : vector<8x8xf32>
    %53 = arith.truncf %39 : vector<8x8xf32> to vector<8x8xbf16>
    %cst_35 = arith.constant dense<0.000000e+00> : vector<8x8xf32>
    %54 = tpu.matmul %53, %28, %cst_35 {dimension_numbers = #tpu.dot_dimension_numbers<[1], [0], [0], [1], [0, 0, 1, 1], [], []>} : vector<8x8xbf16>, vector<8x8xbf16>, vector<8x8xf32> -> vector<8x8xf32>
    %55 = arith.addf %52, %54 : vector<8x8xf32>
    %c0_36 = arith.constant 0 : index
    %c0_37 = arith.constant 0 : index
    %c0_38 = arith.constant 0 : index
    %56 = vector.load %arg19[%c0_36, %c0_37, %c0_38] : memref<4x8x8xf32, #tpu.memory_space<vmem>>, vector<1x8x8xf32>
    %57 = vector.shape_cast %56 : vector<1x8x8xf32> to vector<8x8xf32>
    %58 = vector.shape_cast %55 : vector<8x8xf32> to vector<1x8x8xf32>
    tpu.vector_store %arg19[%c0_36, %c0_37, %c0_38], %58 {strides = array<i32>} : memref<4x8x8xf32, #tpu.memory_space<vmem>>, vector<1x8x8xf32>,
    %c0_39 = arith.constant 0 : index
    %c0_40 = arith.constant 0 : index
    %c0_41 = arith.constant 0 : index
    %59 = vector.load %arg20[%c0_39, %c0_40, %c0_41] : memref<4x8x1xf32, #tpu.memory_space<vmem>>, vector<1x8x1xf32>
    %60 = vector.shape_cast %59 : vector<1x8x1xf32> to vector<8x1xf32>
    %61 = vector.shape_cast %34 : vector<8x1xf32> to vector<1x8x1xf32>
    tpu.vector_store %arg20[%c0_39, %c0_40, %c0_41], %61 {strides = array<i32>} : memref<4x8x1xf32, #tpu.memory_space<vmem>>, vector<1x8x1xf32>,
    %62 = vector.extract_strided_slice %22 {offsets = [0, 8], sizes = [8, 8], strides = [1, 1]} : vector<8x32xf32> to vector<8x8xf32>
    %63 = arith.truncf %62 : vector<8x8xf32> to vector<8x8xbf16>
    %64 = vector.extract_strided_slice %16 {offsets = [0, 8], sizes = [8, 8], strides = [1, 1]} : vector<8x32xf32> to vector<8x8xf32>
    %65 = arith.truncf %64 : vector<8x8xf32> to vector<8x8xbf16>
    %66 = vector.extract_strided_slice %21 {offsets = [0, 8], sizes = [8, 8], strides = [1, 1]} : vector<8x32xf32> to vector<8x8xf32>
    %67 = arith.truncf %66 : vector<8x8xf32> to vector<8x8xbf16>
    %cst_42 = arith.constant dense<0.000000e+00> : vector<8x8xf32>
    %68 = tpu.matmul %63, %65, %cst_42 {dimension_numbers = #tpu.dot_dimension_numbers<[1], [1], [0], [0], [0, 0, 1, 0], [], []>} : vector<8x8xbf16>, vector<8x8xbf16>, vector<8x8xf32> -> vector<8x8xf32>
    %c1 = arith.constant 1 : index
    %c0_43 = arith.constant 0 : index
    %c0_44 = arith.constant 0 : index
    %69 = vector.load %arg20[%c1, %c0_43, %c0_44] : memref<4x8x1xf32, #tpu.memory_space<vmem>>, vector<1x8x1xf32>
    %70 = vector.shape_cast %69 : vector<1x8x1xf32> to vector<8x1xf32>
    %cst_45 = arith.constant dense<0xFF800000> : vector<8xf32>
    %71 = vector.multi_reduction <maximumf>, %68, %cst_45 [1] : vector<8x8xf32> to vector<8xf32>
    %72 = vector.shape_cast %71 : vector<8xf32> to vector<8x1xf32>
    %73 = arith.maximumf %70, %72 : vector<8x1xf32>
    %74 = arith.subf %70, %73 : vector<8x1xf32>
    %75 = math.exp %74 : vector<8x1xf32>
    %76 = vector.broadcast %73 : vector<8x1xf32> to vector<8x8xf32>
    %77 = arith.subf %68, %76 : vector<8x8xf32>
    %78 = math.exp %77 : vector<8x8xf32>
    %c1_46 = arith.constant 1 : index
    %c0_47 = arith.constant 0 : index
    %c0_48 = arith.constant 0 : index
    %79 = vector.load %arg21[%c1_46, %c0_47, %c0_48] : memref<4x8x1xf32, #tpu.memory_space<vmem>>, vector<1x8x1xf32>
    %80 = vector.shape_cast %79 : vector<1x8x1xf32> to vector<8x1xf32>
    %81 = arith.mulf %75, %80 : vector<8x1xf32>
    %cst_49 = arith.constant dense<0.000000e+00> : vector<8xf32>
    %82 = vector.multi_reduction <add>, %78, %cst_49 [1] : vector<8x8xf32> to vector<8xf32>
    %83 = vector.shape_cast %82 : vector<8xf32> to vector<8x1xf32>
    %84 = arith.addf %81, %83 : vector<8x1xf32>
    %c1_50 = arith.constant 1 : index
    %c0_51 = arith.constant 0 : index
    %c0_52 = arith.constant 0 : index
    %85 = vector.load %arg21[%c1_50, %c0_51, %c0_52] : memref<4x8x1xf32, #tpu.memory_space<vmem>>, vector<1x8x1xf32>
    %86 = vector.shape_cast %85 : vector<1x8x1xf32> to vector<8x1xf32>
    %87 = vector.shape_cast %84 : vector<8x1xf32> to vector<1x8x1xf32>
    tpu.vector_store %arg21[%c1_50, %c0_51, %c0_52], %87 {strides = array<i32>} : memref<4x8x1xf32, #tpu.memory_space<vmem>>, vector<1x8x1xf32>,
    %c1_53 = arith.constant 1 : index
    %c0_54 = arith.constant 0 : index
    %c0_55 = arith.constant 0 : index
    %88 = vector.load %arg19[%c1_53, %c0_54, %c0_55] : memref<4x8x8xf32, #tpu.memory_space<vmem>>, vector<1x8x8xf32>
    %89 = vector.shape_cast %88 : vector<1x8x8xf32> to vector<8x8xf32>
    %90 = vector.broadcast %75 : vector<8x1xf32> to vector<8x8xf32>
    %91 = arith.mulf %90, %89 : vector<8x8xf32>
    %92 = arith.truncf %78 : vector<8x8xf32> to vector<8x8xbf16>
    %cst_56 = arith.constant dense<0.000000e+00> : vector<8x8xf32>
    %93 = tpu.matmul %92, %67, %cst_56 {dimension_numbers = #tpu.dot_dimension_numbers<[1], [0], [0], [1], [0, 0, 1, 1], [], []>} : vector<8x8xbf16>, vector<8x8xbf16>, vector<8x8xf32> -> vector<8x8xf32>
    %94 = arith.addf %91, %93 : vector<8x8xf32>
    %c1_57 = arith.constant 1 : index
    %c0_58 = arith.constant 0 : index
    %c0_59 = arith.constant 0 : index
    %95 = vector.load %arg19[%c1_57, %c0_58, %c0_59] : memref<4x8x8xf32, #tpu.memory_space<vmem>>, vector<1x8x8xf32>
    %96 = vector.shape_cast %95 : vector<1x8x8xf32> to vector<8x8xf32>
    %97 = vector.shape_cast %94 : vector<8x8xf32> to vector<1x8x8xf32>
    tpu.vector_store %arg19[%c1_57, %c0_58, %c0_59], %97 {strides = array<i32>} : memref<4x8x8xf32, #tpu.memory_space<vmem>>, vector<1x8x8xf32>,
    %c1_60 = arith.constant 1 : index
    %c0_61 = arith.constant 0 : index
    %c0_62 = arith.constant 0 : index
    %98 = vector.load %arg20[%c1_60, %c0_61, %c0_62] : memref<4x8x1xf32, #tpu.memory_space<vmem>>, vector<1x8x1xf32>
    %99 = vector.shape_cast %98 : vector<1x8x1xf32> to vector<8x1xf32>
    %100 = vector.shape_cast %73 : vector<8x1xf32> to vector<1x8x1xf32>
    tpu.vector_store %arg20[%c1_60, %c0_61, %c0_62], %100 {strides = array<i32>} : memref<4x8x1xf32, #tpu.memory_space<vmem>>, vector<1x8x1xf32>,
    %101 = vector.extract_strided_slice %22 {offsets = [0, 16], sizes = [8, 8], strides = [1, 1]} : vector<8x32xf32> to vector<8x8xf32>
    %102 = arith.truncf %101 : vector<8x8xf32> to vector<8x8xbf16>
    %103 = vector.extract_strided_slice %16 {offsets = [0, 16], sizes = [8, 8], strides = [1, 1]} : vector<8x32xf32> to vector<8x8xf32>
    %104 = arith.truncf %103 : vector<8x8xf32> to vector<8x8xbf16>
    %105 = vector.extract_strided_slice %21 {offsets = [0, 16], sizes = [8, 8], strides = [1, 1]} : vector<8x32xf32> to vector<8x8xf32>
    %106 = arith.truncf %105 : vector<8x8xf32> to vector<8x8xbf16>
    %cst_63 = arith.constant dense<0.000000e+00> : vector<8x8xf32>
    %107 = tpu.matmul %102, %104, %cst_63 {dimension_numbers = #tpu.dot_dimension_numbers<[1], [1], [0], [0], [0, 0, 1, 0], [], []>} : vector<8x8xbf16>, vector<8x8xbf16>, vector<8x8xf32> -> vector<8x8xf32>
    %c2 = arith.constant 2 : index
    %c0_64 = arith.constant 0 : index
    %c0_65 = arith.constant 0 : index
    %108 = vector.load %arg20[%c2, %c0_64, %c0_65] : memref<4x8x1xf32, #tpu.memory_space<vmem>>, vector<1x8x1xf32>
    %109 = vector.shape_cast %108 : vector<1x8x1xf32> to vector<8x1xf32>
    %cst_66 = arith.constant dense<0xFF800000> : vector<8xf32>
    %110 = vector.multi_reduction <maximumf>, %107, %cst_66 [1] : vector<8x8xf32> to vector<8xf32>
    %111 = vector.shape_cast %110 : vector<8xf32> to vector<8x1xf32>
    %112 = arith.maximumf %109, %111 : vector<8x1xf32>
    %113 = arith.subf %109, %112 : vector<8x1xf32>
    %114 = math.exp %113 : vector<8x1xf32>
    %115 = vector.broadcast %112 : vector<8x1xf32> to vector<8x8xf32>
    %116 = arith.subf %107, %115 : vector<8x8xf32>
    %117 = math.exp %116 : vector<8x8xf32>
    %c2_67 = arith.constant 2 : index
    %c0_68 = arith.constant 0 : index
    %c0_69 = arith.constant 0 : index
    %118 = vector.load %arg21[%c2_67, %c0_68, %c0_69] : memref<4x8x1xf32, #tpu.memory_space<vmem>>, vector<1x8x1xf32>
    %119 = vector.shape_cast %118 : vector<1x8x1xf32> to vector<8x1xf32>
    %120 = arith.mulf %114, %119 : vector<8x1xf32>
    %cst_70 = arith.constant dense<0.000000e+00> : vector<8xf32>
    %121 = vector.multi_reduction <add>, %117, %cst_70 [1] : vector<8x8xf32> to vector<8xf32>
    %122 = vector.shape_cast %121 : vector<8xf32> to vector<8x1xf32>
    %123 = arith.addf %120, %122 : vector<8x1xf32>
    %c2_71 = arith.constant 2 : index
    %c0_72 = arith.constant 0 : index
    %c0_73 = arith.constant 0 : index
    %124 = vector.load %arg21[%c2_71, %c0_72, %c0_73] : memref<4x8x1xf32, #tpu.memory_space<vmem>>, vector<1x8x1xf32>
    %125 = vector.shape_cast %124 : vector<1x8x1xf32> to vector<8x1xf32>
    %126 = vector.shape_cast %123 : vector<8x1xf32> to vector<1x8x1xf32>
    tpu.vector_store %arg21[%c2_71, %c0_72, %c0_73], %126 {strides = array<i32>} : memref<4x8x1xf32, #tpu.memory_space<vmem>>, vector<1x8x1xf32>,
    %c2_74 = arith.constant 2 : index
    %c0_75 = arith.constant 0 : index
    %c0_76 = arith.constant 0 : index
    %127 = vector.load %arg19[%c2_74, %c0_75, %c0_76] : memref<4x8x8xf32, #tpu.memory_space<vmem>>, vector<1x8x8xf32>
    %128 = vector.shape_cast %127 : vector<1x8x8xf32> to vector<8x8xf32>
    %129 = vector.broadcast %114 : vector<8x1xf32> to vector<8x8xf32>
    %130 = arith.mulf %129, %128 : vector<8x8xf32>
    %131 = arith.truncf %117 : vector<8x8xf32> to vector<8x8xbf16>
    %cst_77 = arith.constant dense<0.000000e+00> : vector<8x8xf32>
    %132 = tpu.matmul %131, %106, %cst_77 {dimension_numbers = #tpu.dot_dimension_numbers<[1], [0], [0], [1], [0, 0, 1, 1], [], []>} : vector<8x8xbf16>, vector<8x8xbf16>, vector<8x8xf32> -> vector<8x8xf32>
    %133 = arith.addf %130, %132 : vector<8x8xf32>
    %c2_78 = arith.constant 2 : index
    %c0_79 = arith.constant 0 : index
    %c0_80 = arith.constant 0 : index
    %134 = vector.load %arg19[%c2_78, %c0_79, %c0_80] : memref<4x8x8xf32, #tpu.memory_space<vmem>>, vector<1x8x8xf32>
    %135 = vector.shape_cast %134 : vector<1x8x8xf32> to vector<8x8xf32>
    %136 = vector.shape_cast %133 : vector<8x8xf32> to vector<1x8x8xf32>
    tpu.vector_store %arg19[%c2_78, %c0_79, %c0_80], %136 {strides = array<i32>} : memref<4x8x8xf32, #tpu.memory_space<vmem>>, vector<1x8x8xf32>,
    %c2_81 = arith.constant 2 : index
    %c0_82 = arith.constant 0 : index
    %c0_83 = arith.constant 0 : index
    %137 = vector.load %arg20[%c2_81, %c0_82, %c0_83] : memref<4x8x1xf32, #tpu.memory_space<vmem>>, vector<1x8x1xf32>
    %138 = vector.shape_cast %137 : vector<1x8x1xf32> to vector<8x1xf32>
    %139 = vector.shape_cast %112 : vector<8x1xf32> to vector<1x8x1xf32>
    tpu.vector_store %arg20[%c2_81, %c0_82, %c0_83], %139 {strides = array<i32>} : memref<4x8x1xf32, #tpu.memory_space<vmem>>, vector<1x8x1xf32>,
    %140 = vector.extract_strided_slice %22 {offsets = [0, 24], sizes = [8, 8], strides = [1, 1]} : vector<8x32xf32> to vector<8x8xf32>
    %141 = arith.truncf %140 : vector<8x8xf32> to vector<8x8xbf16>
    %142 = vector.extract_strided_slice %16 {offsets = [0, 24], sizes = [8, 8], strides = [1, 1]} : vector<8x32xf32> to vector<8x8xf32>
    %143 = arith.truncf %142 : vector<8x8xf32> to vector<8x8xbf16>
    %144 = vector.extract_strided_slice %21 {offsets = [0, 24], sizes = [8, 8], strides = [1, 1]} : vector<8x32xf32> to vector<8x8xf32>
    %145 = arith.truncf %144 : vector<8x8xf32> to vector<8x8xbf16>
    %cst_84 = arith.constant dense<0.000000e+00> : vector<8x8xf32>
    %146 = tpu.matmul %141, %143, %cst_84 {dimension_numbers = #tpu.dot_dimension_numbers<[1], [1], [0], [0], [0, 0, 1, 0], [], []>} : vector<8x8xbf16>, vector<8x8xbf16>, vector<8x8xf32> -> vector<8x8xf32>
    %c3 = arith.constant 3 : index
    %c0_85 = arith.constant 0 : index
    %c0_86 = arith.constant 0 : index
    %147 = vector.load %arg20[%c3, %c0_85, %c0_86] : memref<4x8x1xf32, #tpu.memory_space<vmem>>, vector<1x8x1xf32>
    %148 = vector.shape_cast %147 : vector<1x8x1xf32> to vector<8x1xf32>
    %cst_87 = arith.constant dense<0xFF800000> : vector<8xf32>
    %149 = vector.multi_reduction <maximumf>, %146, %cst_87 [1] : vector<8x8xf32> to vector<8xf32>
    %150 = vector.shape_cast %149 : vector<8xf32> to vector<8x1xf32>
    %151 = arith.maximumf %148, %150 : vector<8x1xf32>
    %152 = arith.subf %148, %151 : vector<8x1xf32>
    %153 = math.exp %152 : vector<8x1xf32>
    %154 = vector.broadcast %151 : vector<8x1xf32> to vector<8x8xf32>
    %155 = arith.subf %146, %154 : vector<8x8xf32>
    %156 = math.exp %155 : vector<8x8xf32>
    %c3_88 = arith.constant 3 : index
    %c0_89 = arith.constant 0 : index
    %c0_90 = arith.constant 0 : index
    %157 = vector.load %arg21[%c3_88, %c0_89, %c0_90] : memref<4x8x1xf32, #tpu.memory_space<vmem>>, vector<1x8x1xf32>
    %158 = vector.shape_cast %157 : vector<1x8x1xf32> to vector<8x1xf32>
    %159 = arith.mulf %153, %158 : vector<8x1xf32>
    %cst_91 = arith.constant dense<0.000000e+00> : vector<8xf32>
    %160 = vector.multi_reduction <add>, %156, %cst_91 [1] : vector<8x8xf32> to vector<8xf32>
    %161 = vector.shape_cast %160 : vector<8xf32> to vector<8x1xf32>
    %162 = arith.addf %159, %161 : vector<8x1xf32>
    %c3_92 = arith.constant 3 : index
    %c0_93 = arith.constant 0 : index
    %c0_94 = arith.constant 0 : index
    %163 = vector.load %arg21[%c3_92, %c0_93, %c0_94] : memref<4x8x1xf32, #tpu.memory_space<vmem>>, vector<1x8x1xf32>
    %164 = vector.shape_cast %163 : vector<1x8x1xf32> to vector<8x1xf32>
    %165 = vector.shape_cast %162 : vector<8x1xf32> to vector<1x8x1xf32>
    tpu.vector_store %arg21[%c3_92, %c0_93, %c0_94], %165 {strides = array<i32>} : memref<4x8x1xf32, #tpu.memory_space<vmem>>, vector<1x8x1xf32>,
    %c3_95 = arith.constant 3 : index
    %c0_96 = arith.constant 0 : index
    %c0_97 = arith.constant 0 : index
    %166 = vector.load %arg19[%c3_95, %c0_96, %c0_97] : memref<4x8x8xf32, #tpu.memory_space<vmem>>, vector<1x8x8xf32>
    %167 = vector.shape_cast %166 : vector<1x8x8xf32> to vector<8x8xf32>
    %168 = vector.broadcast %153 : vector<8x1xf32> to vector<8x8xf32>
    %169 = arith.mulf %168, %167 : vector<8x8xf32>
    %170 = arith.truncf %156 : vector<8x8xf32> to vector<8x8xbf16>
    %cst_98 = arith.constant dense<0.000000e+00> : vector<8x8xf32>
    %171 = tpu.matmul %170, %145, %cst_98 {dimension_numbers = #tpu.dot_dimension_numbers<[1], [0], [0], [1], [0, 0, 1, 1], [], []>} : vector<8x8xbf16>, vector<8x8xbf16>, vector<8x8xf32> -> vector<8x8xf32>
    %172 = arith.addf %169, %171 : vector<8x8xf32>
    %c3_99 = arith.constant 3 : index
    %c0_100 = arith.constant 0 : index
    %c0_101 = arith.constant 0 : index
    %173 = vector.load %arg19[%c3_99, %c0_100, %c0_101] : memref<4x8x8xf32, #tpu.memory_space<vmem>>, vector<1x8x8xf32>
    %174 = vector.shape_cast %173 : vector<1x8x8xf32> to vector<8x8xf32>
    %175 = vector.shape_cast %172 : vector<8x8xf32> to vector<1x8x8xf32>
    tpu.vector_store %arg19[%c3_99, %c0_100, %c0_101], %175 {strides = array<i32>} : memref<4x8x8xf32, #tpu.memory_space<vmem>>, vector<1x8x8xf32>,
    %c3_102 = arith.constant 3 : index
    %c0_103 = arith.constant 0 : index
    %c0_104 = arith.constant 0 : index
    %176 = vector.load %arg20[%c3_102, %c0_103, %c0_104] : memref<4x8x1xf32, #tpu.memory_space<vmem>>, vector<1x8x1xf32>
    %177 = vector.shape_cast %176 : vector<1x8x1xf32> to vector<8x1xf32>
    %178 = vector.shape_cast %151 : vector<8x1xf32> to vector<1x8x1xf32>
    tpu.vector_store %arg20[%c3_102, %c0_103, %c0_104], %178 {strides = array<i32>} : memref<4x8x1xf32, #tpu.memory_space<vmem>>, vector<1x8x1xf32>,
    %c0_i32_105 = arith.constant 0 : i32
    %179 = arith.cmpi eq, %arg2, %c0_i32_105 : i32
    %180 = arith.extui %179 : i1 to i32
    %c0_i32_106 = arith.constant 0 : i32
    %181 = arith.cmpi ne, %180, %c0_i32_106 : i32
    scf.if %181 {
      %c0_107 = arith.constant 0 : index
      %c0_108 = arith.constant 0 : index
      %c0_109 = arith.constant 0 : index
      %182 = vector.load %arg19[%c0_107, %c0_108, %c0_109] : memref<4x8x8xf32, #tpu.memory_space<vmem>>, vector<1x8x8xf32>
      %183 = vector.shape_cast %182 : vector<1x8x8xf32> to vector<8x8xf32>
      %c0_110 = arith.constant 0 : index
      %c0_111 = arith.constant 0 : index
      %c0_112 = arith.constant 0 : index
      %184 = vector.load %arg21[%c0_110, %c0_111, %c0_112] : memref<4x8x1xf32, #tpu.memory_space<vmem>>, vector<1x8x1xf32>
      %185 = vector.shape_cast %184 : vector<1x8x1xf32> to vector<8x1xf32>
      %186 = tpu.reciprocal %185 {approx = true} : vector<8x1xf32> -> vector<8x1xf32>
      %187 = vector.broadcast %186 : vector<8x1xf32> to vector<8x8xf32>
      %188 = arith.mulf %183, %187 : vector<8x8xf32>
      %c1_113 = arith.constant 1 : index
      %c0_114 = arith.constant 0 : index
      %c0_115 = arith.constant 0 : index
      %189 = vector.load %arg19[%c1_113, %c0_114, %c0_115] : memref<4x8x8xf32, #tpu.memory_space<vmem>>, vector<1x8x8xf32>
      %190 = vector.shape_cast %189 : vector<1x8x8xf32> to vector<8x8xf32>
      %c1_116 = arith.constant 1 : index
      %c0_117 = arith.constant 0 : index
      %c0_118 = arith.constant 0 : index
      %191 = vector.load %arg21[%c1_116, %c0_117, %c0_118] : memref<4x8x1xf32, #tpu.memory_space<vmem>>, vector<1x8x1xf32>
      %192 = vector.shape_cast %191 : vector<1x8x1xf32> to vector<8x1xf32>
      %193 = tpu.reciprocal %192 {approx = true} : vector<8x1xf32> -> vector<8x1xf32>
      %194 = vector.broadcast %193 : vector<8x1xf32> to vector<8x8xf32>
      %195 = arith.mulf %190, %194 : vector<8x8xf32>
      %c2_119 = arith.constant 2 : index
      %c0_120 = arith.constant 0 : index
      %c0_121 = arith.constant 0 : index
      %196 = vector.load %arg19[%c2_119, %c0_120, %c0_121] : memref<4x8x8xf32, #tpu.memory_space<vmem>>, vector<1x8x8xf32>
      %197 = vector.shape_cast %196 : vector<1x8x8xf32> to vector<8x8xf32>
      %c2_122 = arith.constant 2 : index
      %c0_123 = arith.constant 0 : index
      %c0_124 = arith.constant 0 : index
      %198 = vector.load %arg21[%c2_122, %c0_123, %c0_124] : memref<4x8x1xf32, #tpu.memory_space<vmem>>, vector<1x8x1xf32>
      %199 = vector.shape_cast %198 : vector<1x8x1xf32> to vector<8x1xf32>
      %200 = tpu.reciprocal %199 {approx = true} : vector<8x1xf32> -> vector<8x1xf32>
      %201 = vector.broadcast %200 : vector<8x1xf32> to vector<8x8xf32>
      %202 = arith.mulf %197, %201 : vector<8x8xf32>
      %c3_125 = arith.constant 3 : index
      %c0_126 = arith.constant 0 : index
      %c0_127 = arith.constant 0 : index
      %203 = vector.load %arg19[%c3_125, %c0_126, %c0_127] : memref<4x8x8xf32, #tpu.memory_space<vmem>>, vector<1x8x8xf32>
      %204 = vector.shape_cast %203 : vector<1x8x8xf32> to vector<8x8xf32>
      %c3_128 = arith.constant 3 : index
      %c0_129 = arith.constant 0 : index
      %c0_130 = arith.constant 0 : index
      %205 = vector.load %arg21[%c3_128, %c0_129, %c0_130] : memref<4x8x1xf32, #tpu.memory_space<vmem>>, vector<1x8x1xf32>
      %206 = vector.shape_cast %205 : vector<1x8x1xf32> to vector<8x1xf32>
      %207 = tpu.reciprocal %206 {approx = true} : vector<8x1xf32> -> vector<8x1xf32>
      %208 = vector.broadcast %207 : vector<8x1xf32> to vector<8x8xf32>
      %209 = arith.mulf %204, %208 : vector<8x8xf32>
      %210 = tpu.concatenate %188, %195, %202, %209 in 1 : vector<8x8xf32>, vector<8x8xf32>, vector<8x8xf32>, vector<8x8xf32> -> vector<8x32xf32>
      %211 = arith.truncf %210 : vector<8x32xf32> to vector<8x32xbf16>
      %c0_131 = arith.constant 0 : index
      %c0_132 = arith.constant 0 : index
      %212 = vector.load %arg13[%c0_131, %c0_132] : memref<32x32xbf16, #tpu.memory_space<vmem>>, vector<32x32xbf16>
      %cst_133 = arith.constant dense<0.000000e+00> : vector<8x32xf32>
      %213 = tpu.matmul %211, %212, %cst_133 {dimension_numbers = #tpu.dot_dimension_numbers<[1], [0], [0], [1], [0, 0, 1, 1], [], []>} : vector<8x32xbf16>, vector<32x32xbf16>, vector<8x32xf32> -> vector<8x32xf32>
      %c0_134 = arith.constant 0 : index
      %c0_135 = arith.constant 0 : index
      %214 = vector.load %arg14[%c0_134, %c0_135] : memref<1x32xf32, #tpu.memory_space<vmem>>, vector<1x32xf32>
      %215 = vector.broadcast %214 : vector<1x32xf32> to vector<8x32xf32>
      %216 = arith.addf %213, %215 : vector<8x32xf32>
      %c0_136 = arith.constant 0 : index
      %c0_137 = arith.constant 0 : index
      %c0_138 = arith.constant 0 : index
      %217 = vector.load %arg3[%c0_136, %c0_137, %c0_138] : memref<1x8x32xf32, #tpu.memory_space<vmem>>, vector<1x8x32xf32>
      %218 = vector.shape_cast %217 : vector<1x8x32xf32> to vector<8x32xf32>
      %219 = arith.addf %218, %216 : vector<8x32xf32>
      %cst_139 = arith.constant dense<0.000000e+00> : vector<8xf32>
      %220 = vector.multi_reduction <add>, %219, %cst_139 [1] : vector<8x32xf32> to vector<8xf32>
      %221 = vector.shape_cast %220 : vector<8xf32> to vector<8x1xf32>
      %cst_140 = arith.constant 3.200000e+01 : f32
      %222 = vector.broadcast %cst_140 : f32 to vector<8x1xf32>
      %223 = arith.divf %221, %222 : vector<8x1xf32>
      %224 = vector.broadcast %223 : vector<8x1xf32> to vector<8x32xf32>
      %225 = arith.subf %219, %224 : vector<8x32xf32>
      %226 = vector.broadcast %223 : vector<8x1xf32> to vector<8x32xf32>
      %227 = arith.subf %219, %226 : vector<8x32xf32>
      %228 = arith.mulf %225, %227 : vector<8x32xf32>
      %cst_141 = arith.constant dense<0.000000e+00> : vector<8xf32>
      %229 = vector.multi_reduction <add>, %228, %cst_141 [1] : vector<8x32xf32> to vector<8xf32>
      %230 = vector.shape_cast %229 : vector<8xf32> to vector<8x1xf32>
      %cst_142 = arith.constant 3.200000e+01 : f32
      %231 = vector.broadcast %cst_142 : f32 to vector<8x1xf32>
      %232 = arith.divf %230, %231 : vector<8x1xf32>
      %233 = vector.broadcast %223 : vector<8x1xf32> to vector<8x32xf32>
      %234 = arith.subf %219, %233 : vector<8x32xf32>
      %cst_143 = arith.constant 9.99999974E-6 : f32
      %235 = vector.broadcast %cst_143 : f32 to vector<8x1xf32>
      %236 = arith.addf %232, %235 : vector<8x1xf32>
      %237 = math.rsqrt %236 : vector<8x1xf32>
      %238 = vector.broadcast %237 : vector<8x1xf32> to vector<8x32xf32>
      %239 = arith.mulf %234, %238 : vector<8x32xf32>
      %c0_144 = arith.constant 0 : index
      %c0_145 = arith.constant 0 : index
      %240 = vector.load %arg15[%c0_144, %c0_145] : memref<1x32xf32, #tpu.memory_space<vmem>>, vector<1x32xf32>
      %241 = vector.broadcast %240 : vector<1x32xf32> to vector<8x32xf32>
      %242 = arith.mulf %239, %241 : vector<8x32xf32>
      %c0_146 = arith.constant 0 : index
      %c0_147 = arith.constant 0 : index
      %243 = vector.load %arg16[%c0_146, %c0_147] : memref<1x32xf32, #tpu.memory_space<vmem>>, vector<1x32xf32>
      %244 = vector.broadcast %243 : vector<1x32xf32> to vector<8x32xf32>
      %245 = arith.addf %242, %244 : vector<8x32xf32>
      %c0_148 = arith.constant 0 : index
      %c0_149 = arith.constant 0 : index
      %c0_150 = arith.constant 0 : index
      %246 = vector.load %arg17[%c0_148, %c0_149, %c0_150] : memref<1x8x32xf32, #tpu.memory_space<vmem>>, vector<1x8x32xf32>
      %247 = vector.shape_cast %246 : vector<1x8x32xf32> to vector<8x32xf32>
      %248 = vector.shape_cast %245 : vector<8x32xf32> to vector<1x8x32xf32>
      tpu.vector_store %arg17[%c0_148, %c0_149, %c0_150], %248 {strides = array<i32>} : memref<1x8x32xf32, #tpu.memory_space<vmem>>, vector<1x8x32xf32>,
    } else {
    }
    return
  }
  func.func @transform_0(%arg0: i32, %arg1: i32, %arg2: i32) -> (i32, i32, i32) {
    %c0_i32 = arith.constant 0 : i32
    %c0_i32_0 = arith.constant 0 : i32
    return %arg0, %arg1, %c0_i32 : i32, i32, i32
  }
  func.func @transform_1(%arg0: i32, %arg1: i32, %arg2: i32) -> (i32, i32, i32) {
    %c0_i32 = arith.constant 0 : i32
    %c0_i32_0 = arith.constant 0 : i32
    return %arg0, %arg1, %c0_i32 : i32, i32, i32
  }
  func.func @transform_2(%arg0: i32, %arg1: i32, %arg2: i32) -> (i32, i32, i32) {
    %c0_i32 = arith.constant 0 : i32
    %c0_i32_0 = arith.constant 0 : i32
    return %arg0, %arg2, %c0_i32 : i32, i32, i32
  }
  func.func @transform_3(%arg0: i32, %arg1: i32, %arg2: i32) -> (i32, i32, i32) {
    %c0_i32 = arith.constant 0 : i32
    %c0_i32_0 = arith.constant 0 : i32
    return %arg0, %arg2, %c0_i32 : i32, i32, i32
  }
  func.func @transform_4(%arg0: i32, %arg1: i32, %arg2: i32) -> (i32, i32) {
    %c0_i32 = arith.constant 0 : i32
    %c0_i32_0 = arith.constant 0 : i32
    %c0_i32_1 = arith.constant 0 : i32
    return %c0_i32, %c0_i32_0 : i32, i32
  }
  func.func @transform_5(%arg0: i32, %arg1: i32, %arg2: i32) -> (i32, i32) {
    %c0_i32 = arith.constant 0 : i32
    %c0_i32_0 = arith.constant 0 : i32
    %c0_i32_1 = arith.constant 0 : i32
    return %c0_i32, %c0_i32_0 : i32, i32
  }
  func.func @transform_6(%arg0: i32, %arg1: i32, %arg2: i32) -> (i32, i32) {
    %c0_i32 = arith.constant 0 : i32
    %c0_i32_0 = arith.constant 0 : i32
    %c0_i32_1 = arith.constant 0 : i32
    return %c0_i32, %c0_i32_0 : i32, i32
  }
  func.func @transform_7(%arg0: i32, %arg1: i32, %arg2: i32) -> (i32, i32) {
    %c0_i32 = arith.constant 0 : i32
    %c0_i32_0 = arith.constant 0 : i32
    %c0_i32_1 = arith.constant 0 : i32
    return %c0_i32, %c0_i32_0 : i32, i32
  }
  func.func @transform_8(%arg0: i32, %arg1: i32, %arg2: i32) -> (i32, i32) {
    %c0_i32 = arith.constant 0 : i32
    %c0_i32_0 = arith.constant 0 : i32
    %c0_i32_1 = arith.constant 0 : i32
    return %c0_i32, %c0_i32_0 : i32, i32
  }
  func.func @transform_9(%arg0: i32, %arg1: i32, %arg2: i32) -> (i32, i32) {
    %c0_i32 = arith.constant 0 : i32
    %c0_i32_0 = arith.constant 0 : i32
    %c0_i32_1 = arith.constant 0 : i32
    return %c0_i32, %c0_i32_0 : i32, i32
  }
  func.func @transform_10(%arg0: i32, %arg1: i32, %arg2: i32) -> (i32, i32) {
    %c0_i32 = arith.constant 0 : i32
    %c0_i32_0 = arith.constant 0 : i32
    %c0_i32_1 = arith.constant 0 : i32
    return %c0_i32, %c0_i32_0 : i32, i32
  }
  func.func @transform_11(%arg0: i32, %arg1: i32, %arg2: i32) -> (i32, i32) {
    %c0_i32 = arith.constant 0 : i32
    %c0_i32_0 = arith.constant 0 : i32
    %c0_i32_1 = arith.constant 0 : i32
    return %c0_i32, %c0_i32_0 : i32, i32
  }
  func.func @transform_12(%arg0: i32, %arg1: i32, %arg2: i32) -> (i32, i32) {
    %c0_i32 = arith.constant 0 : i32
    %c0_i32_0 = arith.constant 0 : i32
    %c0_i32_1 = arith.constant 0 : i32
    return %c0_i32, %c0_i32_0 : i32, i32
  }
  func.func @transform_13(%arg0: i32, %arg1: i32, %arg2: i32) -> (i32, i32) {
    %c0_i32 = arith.constant 0 : i32
    %c0_i32_0 = arith.constant 0 : i32
    %c0_i32_1 = arith.constant 0 : i32
    return %c0_i32, %c0_i32_0 : i32, i32
  }
  func.func @transform_14(%arg0: i32, %arg1: i32, %arg2: i32) -> (i32, i32, i32) {
    %c0_i32 = arith.constant 0 : i32
    %c0_i32_0 = arith.constant 0 : i32
    return %arg0, %arg1, %c0_i32 : i32, i32, i32
  }
}

</mosaic_0001>

<bundles_post_ra>
// kernel: tpu_custom_call.1
= control target key start
LH: loop header
LB: loop body
LE: loop exit
PB: predicated region body
PF: predicated region fallthrough
CT: control target
= control target key end

     0   :  { %s3672_s0 = inlined_call_operand.hbm [shape: f32[2,8,32], index: 0, kind: input, shape index: {}]   ;;  %s3673_s1 = inlined_call_operand.hbm [shape: f32[2,8,32], index: 1, kind: input, shape index: {}]   ;;  %s3674_s2 = inlined_call_operand.hbm [shape: f32[2,8,32], index: 2, kind: input, shape index: {}]   ;;  %s3675_s3 = inlined_call_operand.hbm [shape: f32[2,8,32], index: 3, kind: input, shape index: {}]   ;;  %s3676_s4 = inlined_call_operand.hbm [shape: bf16[32,32], index: 4, kind: input, shape index: {}]   ;;  %s3677_s5 = inlined_call_operand.hbm [shape: f32[1,32], index: 5, kind: input, shape index: {}]   ;;  %s3678_s6 = inlined_call_operand.hbm [shape: bf16[32,32], index: 6, kind: input, shape index: {}]   ;;  %s3679_s7 = inlined_call_operand.hbm [shape: f32[1,32], index: 7, kind: input, shape index: {}]   ;;  %s3680_s8 = inlined_call_operand.hbm [shape: bf16[32,32], index: 8, kind: input, shape index: {}]   ;;  %s3681_s9 = inlined_call_operand.hbm [shape: f32[1,32], index: 9, kind: input, shape index: {}]   ;;  %s3682_s10 = inlined_call_operand.hbm [shape: bf16[32,32], index: 10, kind: input, shape index: {}]   ;;  %s3683_s11 = inlined_call_operand.hbm [shape: f32[1,32], index: 11, kind: input, shape index: {}]   ;;  %s3684_s12 = inlined_call_operand.hbm [shape: f32[1,32], index: 12, kind: input, shape index: {}]   ;;  %s3685_s13 = inlined_call_operand.hbm [shape: f32[1,32], index: 13, kind: input, shape index: {}]   ;;  %s3686_s14 = inlined_call_operand.hbm [shape: f32[2,8,32], index: 14, kind: output, shape index: {}]  }
   0x1   :  { %3715 = sst [smem:[#allocation46_spill]] %s3672_s0 }
   0x2   :  { %3716 = sst [smem:[#allocation47_spill]] %s3673_s1 }
   0x3   :  { %3717 = sst [smem:[#allocation48_spill]] %s3674_s2 }
   0x4   :  { %3718 = sst [smem:[#allocation49_spill]] %s3675_s3 }
   0x5   :  { %3719 = sst [smem:[#allocation50_spill]] %s3676_s4 }
   0x6   :  { %3720 = sst [smem:[#allocation51_spill]] %s3677_s5 }
   0x7   :  { %3721 = sst [smem:[#allocation52_spill]] %s3678_s6 }
   0x8   :  { %3722 = sst [smem:[#allocation53_spill]] %s3679_s7 }
   0x9   :  { %3723 = sst [smem:[#allocation54_spill]] %s3681_s9 }
   0xa   :  { %3724 = sst [smem:[#allocation55_spill]] %s3683_s11 }
   0xb   :  { %3725 = sst [smem:[#allocation56_spill]] %s3684_s12 }
   0xc   :  { %3726 = sst [smem:[#allocation57_spill]] %s3685_s13 }
   0xd   :  { %3727 = sst [smem:[#allocation58_spill]] %s3686_s14 }
   0xe   :  { %19 = vsyncpa [#allocation7], 0 }
   0xf   :  { %21 = vsyncpa [#allocation7 + $0x1], 0 }
  0x10   :  { %22 = vsyncpa [#allocation10], 0 }
  0x11   :  { %24 = vsyncpa [#allocation10 + $0x1], 0 }
  0x12   :  { %25 = vsyncpa [#allocation13], 0 }
  0x13   :  { %27 = vsyncpa [#allocation13 + $0x1], 0 }
  0x14   :  { %28 = vsyncpa [#allocation16], 0 }
  0x15   :  { %29 = vsyncpa [#allocation19], 0 }
  0x16   :  { %30 = vsyncpa [#allocation22], 0 }
  0x17   :  { %31 = vsyncpa [#allocation25], 0 }
  0x18   :  { %32 = vsyncpa [#allocation28], 0 }
  0x19   :  { %33 = vsyncpa [#allocation8], 0 }
  0x1a   :  { %35 = vsyncpa [#allocation8 + $0x1], 0  ;;  %s2965_s29 = smov 0   ;;  %s2967_s30 = smov 0  }
  0x1b   :  { %s2969_s15 = smov 0   ;;  %s2971_s16 = smov 0  }
  0x1c   :  { %s2973_s17 = smov 0   ;;  %s2975_s18 = smov 0  }
  0x1d LB: > { %3728 = sst [smem:[#allocation40_spill]] %s2853_s16  ;;  %s2996_s19 = sadd.s32 4294967295, %s2861_s18   ;;  %s2861_s18 = sphi %s2975_s18, %s41_s18   ;;  %s2857_s17 = sphi %s2973_s17, %s3789_s17   ;;  %s2853_s16 = sphi %s2971_s16, %s3788_s16   ;;  %s2849_s15 = sphi %s2969_s15, %s3792_s15   ;;  %s2845_s30 = sphi %s2967_s30, %s3791_s30   ;;  %s2841_s29 = sphi %s2965_s29, %s3790_s29  }
  0x1e   : > { %3729 = sst [smem:[#allocation41_spill]] %s2857_s17  ;;  %p1947_p0 = scmp.ge.s32.totalorder %s2861_s18, 1 }
  0x1f   : > { %p3694_p1 = scmp.eq.s32.totalorder %s2996_s19, 0  ;;  %p415_p2 = scmp.lt.s32.totalorder %s2861_s18, 3 }
  0x20   : > { %s2863_s21 = smov [#allocation14]   ;;  %s2864_s24 = smov [#allocation15]  }
  0x21   : > { %p3001_p3 = pnand %p1947_p0, %p415_p2  ;;  %s427_s22 = sshll.u32 %s2863_s21, 4  ;;  %s3005_s22 = int_to_ptr.vmem [resolvable:$true] %s427_s22 }
  0x22   : > { %s441_s25 = sshll.u32 %s2864_s24, 4  ;;  %s2865_s26 = smov [#allocation18]   ;;  %s3016_s25 = int_to_ptr.vmem [resolvable:$true] %s441_s25 }
  0x23   : > { %s3730_s20 = scalar_select %p3001_p3, 1, 0 }
  0x24   : > { %p2171_p4 = pneg %p3001_p3  ;;  %s3018_s27 = sshll.u32 %s2865_s26, 4  ;;  %s466_s27 = int_to_ptr.vmem [resolvable:$true] %s3018_s27 }
  0x25   : > { %3731 = sst [smem:[#allocation42_spill]] %s3730_s20  ;;  %s3733_s4 = sld [smem:[#allocation50_spill]] }
  0x26   : > { %p3012_p6 = pnand %p2171_p4, %p3694_p1 }
  0x28   : > { %s3732_s23 = scalar_select %p3012_p6, 1, 0 }
  0x29   : > { %p3028_p8 = pneg %p3012_p6 }
  0x2b   : > { %s2347_s14 = scalar_lea.hbm %s3733_s4, 256 }
  0x2c   : > { %p2348_p7 = scmp.ne.s32.totalorder %s3733_s4, %s2347_s14  ;;  %p2354_p11 = scmp.lt.u32.totalorder %s2347_s14, %s3733_s4 }
  0x2d   : > { %s3734_s3 = scalar_select %p3028_p8, 1, 0 }
  0x2e   : > { %p2350_p9 = pnand %p3028_p8, %p2348_p7 }
  0x30   : > { %p2351_p10 = pneg %p2350_p9 }
  0x32   : > { %p2356_p12 = pnand %p2354_p11, %p2351_p10 }
  0x34   : > { %2359 = shalt.err (!%p2356_p12)
}
  0x35   : > { %s2360_s16 = scalar_lea.vmem %s3005_s22, 256  ;;  %p2368_p4 = scmp.lt.s32.totalorder %s3005_s22, %s3005_s22 }
  0x36   : > { %p2361_p13 = scmp.ne.s32.totalorder %s3005_s22, %s2360_s16  ;;  %p2369_p5 = scmp.lt.s32.totalorder %s2360_s16, %s2360_s16 }
  0x38   : > { %p2363_p0 = pnand %p2361_p13, %p3028_p8  ;;  %p2370_p7 = por %p2369_p5, %p2368_p4 }
  0x3a   : > { %p2364_p2 = pneg %p2363_p0 }
  0x3c   : > { %p2371_p9 = pnand %p2370_p7, %p2364_p2 }
  0x3e   : > { %2374 = shalt.err (!%p2371_p9)
}
  0x3f   : > { %s3696_s20 = smov 64   ;;  %s3698_s14 = smov 4  }
  0x40   : > { %2174 = dma.hbm_to_vmem [thread:$0]  (!%p3012_p6), %s3733_s4, 256, %s3005_s22, [#allocation13], %s3696_s20, %s3696_s20, %s3698_s14  }
  0x41   : > { %s3735_s5 = sld [smem:[#allocation51_spill]] }
  0x47   : > { %s2375_s16 = scalar_lea.hbm %s3735_s5, 16 }
  0x48   : > { %p2376_p5 = scmp.ne.s32.totalorder %s3735_s5, %s2375_s16  ;;  %p2382_p12 = scmp.lt.u32.totalorder %s2375_s16, %s3735_s5 }
  0x4a   : > { %p2378_p10 = pnand %p2376_p5, %p3028_p8 }
  0x4c   : > { %p2379_p11 = pneg %p2378_p10 }
  0x4e   : > { %p2384_p13 = pnand %p2382_p12, %p2379_p11 }
  0x50   : > { %2387 = shalt.err (!%p2384_p13)
}
  0x51   : > { %s2388_s22 = scalar_lea.vmem %s3016_s25, 16  ;;  %s2395_s0 = scalar_lea.vmem %s3016_s25, 32 }
  0x52   : > { %p2389_p0 = scmp.ne.s32.totalorder %s3016_s25, %s2388_s22  ;;  %p2396_p7 = scmp.lt.s32.totalorder %s3016_s25, %s3016_s25 }
  0x53   : > { %p2397_p9 = scmp.lt.s32.totalorder %s2395_s0, %s2388_s22 }
  0x54   : > { %p2391_p2 = pnand %p2389_p0, %p3028_p8 }
  0x55   : > { %p2398_p5 = por %p2397_p9, %p2396_p7 }
  0x56   : > { %p2392_p4 = pneg %p2391_p2 }
  0x58   : > { %p2399_p10 = pnand %p2398_p5, %p2392_p4 }
  0x5a   : > { %2402 = shalt.err (!%p2399_p10)
}
  0x5b   : > { %2177 = dma.hbm_to_vmem [thread:$0]  (!%p3012_p6), %s3735_s5, 16, %s3016_s25, [#allocation16]  }
  0x5c   : > { %s3736_s7 = sld [smem:[#allocation53_spill]] }
  0x62   : > { %s2403_s21 = scalar_lea.hbm %s3736_s7, 16 }
  0x63   : > { %p2404_p11 = scmp.ne.s32.totalorder %s3736_s7, %s2403_s21  ;;  %p2410_p0 = scmp.lt.u32.totalorder %s2403_s21, %s3736_s7 }
  0x65   : > { %p2406_p12 = pnand %p2404_p11, %p3028_p8 }
  0x67   : > { %p2407_p13 = pneg %p2406_p12 }
  0x69   : > { %p2412_p2 = pnand %p2410_p0, %p2407_p13 }
  0x6b   : > { %2415 = shalt.err (!%p2412_p2)
}
  0x6c   : > { %s2416_s0 = scalar_lea.vmem %s466_s27, 16  ;;  %s2423_s25 = scalar_lea.vmem %s466_s27, 32 }
  0x6d   : > { %p2417_p4 = scmp.ne.s32.totalorder %s466_s27, %s2416_s0  ;;  %p2424_p5 = scmp.lt.s32.totalorder %s466_s27, %s466_s27 }
  0x6e   : > { %p2425_p10 = scmp.lt.s32.totalorder %s2423_s25, %s2416_s0 }
  0x6f   : > { %p2419_p7 = pnand %p2417_p4, %p3028_p8 }
  0x70   : > { %p2426_p1 = por %p2425_p10, %p2424_p5 }
  0x71   : > { %p2420_p9 = pneg %p2419_p7 }
  0x73   : > { %p2427_p3 = pnand %p2426_p1, %p2420_p9 }
  0x75   : > { %2430 = shalt.err (!%p2427_p3)
}
  0x76   : > { %2183 = dma.hbm_to_vmem [thread:$0]  (!%p3012_p6), %s3736_s7, 16, %s466_s27, [#allocation19]  }
  0x77   : > { %s2868_s13 = smov [#allocation21]   ;;  %s2869_s21 = smov [#allocation24]  }
  0x78   : > { %s489_s28 = sshll.u32 %s2868_s13, 4  ;;  %s513_s24 = sshll.u32 %s2869_s21, 4  ;;  %s490_s28 = int_to_ptr.vmem [resolvable:$true] %s489_s28  ;;  %s514_s24 = int_to_ptr.vmem [resolvable:$true] %s513_s24 }
  0x79   : > { %s3737_s9 = sld [smem:[#allocation54_spill]] }
  0x7f   : > { %s2431_s22 = scalar_lea.hbm %s3737_s9, 16 }
  0x80   : > { %p2432_p1 = scmp.ne.s32.totalorder %s3737_s9, %s2431_s22  ;;  %p2438_p12 = scmp.lt.u32.totalorder %s2431_s22, %s3737_s9 }
  0x82   : > { %p2434_p3 = pnand %p2432_p1, %p3028_p8 }
  0x84   : > { %p2435_p11 = pneg %p2434_p3 }
  0x86   : > { %p2440_p13 = pnand %p2438_p12, %p2435_p11 }
  0x88   : > { %2443 = shalt.err (!%p2440_p13)
}
  0x89   : > { %s2444_s27 = scalar_lea.vmem %s490_s28, 16  ;;  %s2451_s12 = scalar_lea.vmem %s490_s28, 32 }
  0x8a   : > { %p2445_p0 = scmp.ne.s32.totalorder %s490_s28, %s2444_s27  ;;  %p2452_p7 = scmp.lt.s32.totalorder %s490_s28, %s490_s28 }
  0x8b   : > { %p2453_p9 = scmp.lt.s32.totalorder %s2451_s12, %s2444_s27 }
  0x8c   : > { %p2447_p2 = pnand %p2445_p0, %p3028_p8 }
  0x8d   : > { %p2454_p5 = por %p2453_p9, %p2452_p7 }
  0x8e   : > { %p2448_p4 = pneg %p2447_p2 }
  0x90   : > { %p2455_p10 = pnand %p2454_p5, %p2448_p4 }
  0x92   : > { %2458 = shalt.err (!%p2455_p10)
}
  0x93   : > { %2189 = dma.hbm_to_vmem [thread:$0]  (!%p3012_p6), %s3737_s9, 16, %s490_s28, [#allocation22]  }
  0x94   : > { %s3738_s11 = sld [smem:[#allocation55_spill]] }
  0x9a   : > { %s2459_s16 = scalar_lea.hbm %s3738_s11, 16 }
  0x9b   : > { %p2460_p1 = scmp.ne.s32.totalorder %s3738_s11, %s2459_s16  ;;  %p2466_p12 = scmp.lt.u32.totalorder %s2459_s16, %s3738_s11 }
  0x9d   : > { %p2462_p3 = pnand %p2460_p1, %p3028_p8 }
  0x9f   : > { %p2463_p11 = pneg %p2462_p3 }
  0xa1   : > { %p2468_p13 = pnand %p2466_p12, %p2463_p11 }
  0xa3   : > { %2471 = shalt.err (!%p2468_p13)
}
  0xa4   : > { %s2472_s27 = scalar_lea.vmem %s514_s24, 16  ;;  %s2479_s28 = scalar_lea.vmem %s514_s24, 32 }
  0xa5   : > { %p2473_p0 = scmp.ne.s32.totalorder %s514_s24, %s2472_s27  ;;  %p2480_p7 = scmp.lt.s32.totalorder %s514_s24, %s514_s24 }
  0xa6   : > { %p2481_p9 = scmp.lt.s32.totalorder %s2479_s28, %s2472_s27 }
  0xa7   : > { %p2475_p2 = pnand %p2473_p0, %p3028_p8 }
  0xa8   : > { %p2482_p5 = por %p2481_p9, %p2480_p7 }
  0xa9   : > { %p2476_p4 = pneg %p2475_p2 }
  0xab   : > { %p2483_p10 = pnand %p2482_p5, %p2476_p4 }
  0xad   : > { %2486 = shalt.err (!%p2483_p10)
}
  0xae   : > { %2195 = dma.hbm_to_vmem [thread:$0]  (!%p3012_p6), %s3738_s11, 16, %s514_s24, [#allocation25]  }
  0xaf   : > { %s1946_s21 = sadd.s32 4294967294, %s2861_s18   ;;  %s60_s20 = sadd.s32 1, %s2857_s17 }
  0xb0   : > { %s69_s26 = sadd.s32 1, %s2849_s15  ;;  %p62_p1 = scmp.ge.s32.totalorder %s60_s20, 2 }
  0xb1   : > { %p76_p3 = scmp.ne.s32.totalorder %s2849_s15, %s2845_s30  ;;  %p77_p11 = scmp.eq.s32.totalorder %s2861_s18, 0 }
  0xb2   : > { %p82_p12 = scmp.ne.s32.totalorder %s2845_s30, %s2841_s29  ;;  %s3794_s20 = smov (%p62_p1, %s60_s20), 0 }
  0xb3   : > { %3739 = sst [smem:[#allocation43_spill]] %s3794_s20  ;;  %p3141_p13 = por %p77_p11, %p76_p3 }
  0xb4   : > { %p3741_p0 = scmp.eq.s32.totalorder %s2996_s19, 0  ;;  %s64_s22 = ssub.s32 %s2857_s17, %s3794_s20 }
  0xb5   : > { %p402_p4 = scmp.eq.s32.totalorder %s2996_s19, 1  ;;  %p67_p7 = scmp.eq.s32.totalorder %s64_s22, 0 }
  0xb6   : > { %p3147_p2 = por %p3741_p0, %p82_p12  ;;  %p408_p9 = scmp.eq.s32.totalorder %s1946_s21, 1 }
  0xb7   : > { %p3154_p5 = por %p402_p4, %p76_p3  ;;  %p2229_p10 = scmp.lt.s32.totalorder %s2861_s18, 2 }
  0xb8   : > { %s3742_s24 = scalar_select %p3147_p2, 1, 0 }
  0xb9   : > { %s3743_s0 = scalar_select %p3154_p5, 1, 0 }
  0xba   : > { %s3160_s25 = scalar_select %p67_p7, %s2849_s15, %s69_s26  }
  0xbb   : > { %p3162_p1 = por %p408_p9, %p82_p12  ;;  %s3700_s27 = sand.u32 1, %s2849_s15  }
  0xbc   : > { %3744 = sst [smem:[#allocation44_spill]] %s3160_s25  ;;  %s3169_s28 = sshll.u32 %s3700_s27, 3 }
  0xbd   : > { %s3745_s2 = scalar_select %p3162_p1, 1, 0 }
  0xbe   : > { %s3172_s12 = sshll.u32 %s2857_s17, 7  ;;  %p3176_p3 = pnand %p2229_p10, %p3141_p13 }
  0xbf   : > { %3746 = sst [smem:[#allocation45_spill]] %s3745_s2  ;;  %s3702_s21 = sand.u32 1, %s2861_s18  }
  0xc0   : > { %s3747_s13 = scalar_select %p3176_p3, 1, 0 }
  0xc1   : > { %s3748_s1 = sld [smem:[#allocation47_spill]]  ;;  %s569_s27 = scalar_lea.vmem [#allocation9], %s3169_s28 }
  0xc2   : > { %s577_s4 = sshll.u32 %s569_s27, 4  ;;  %s3192_s16 = scalar_lea.sflag [#allocation10], %s3702_s21  ;;  %s3188_s4 = int_to_ptr.vmem [resolvable:$true] %s577_s4 }
  0xc3   : > { %p3198_p12 = pneg %p3176_p3 }
  0xc5   : > { %s3749_s7 = scalar_select %p3198_p12, 1, 0 }
  0xc7   : > { %s3185_s14 = scalar_lea.hbm %s3748_s1, %s3172_s12  ;;  %s2492_s27 = scalar_lea.hbm %s3748_s1, 256 }
  0xc8   : > { %s2487_s5 = scalar_lea.hbm %s3185_s14, 128  ;;  %p2493_p4 = scmp.lt.u32.totalorder %s3185_s14, %s3748_s1 }
  0xc9   : > { %p2488_p11 = scmp.ne.s32.totalorder %s3185_s14, %s2487_s5  ;;  %p2494_p7 = scmp.lt.u32.totalorder %s2492_s27, %s2487_s5 }
  0xca   : > { %p2496_p10 = scmp.lt.u32.totalorder %s2487_s5, %s3185_s14 }
  0xcb   : > { %p2490_p13 = pnand %p3198_p12, %p2488_p11  ;;  %p2495_p9 = por %p2494_p7, %p2493_p4 }
  0xcd   : > { %p2491_p0 = pneg %p2490_p13  ;;  %p2497_p1 = por %p2496_p10, %p2495_p9 }
  0xcf   : > { %p2498_p5 = pnand %p2497_p1, %p2491_p0 }
  0xd1   : > { %2501 = shalt.err (!%p2498_p5)
}
  0xd2   : > { %s2502_s21 = scalar_lea.vmem %s3188_s4, 128  ;;  %s2870_s26 = smov [#allocation9]  }
  0xd3   : > { %p2503_p11 = scmp.ne.s32.totalorder %s3188_s4, %s2502_s21  ;;  %s2507_s22 = sshll.u32 %s2870_s26, 4  ;;  %s2508_s22 = int_to_ptr.vmem [resolvable:$false] %s2507_s22 }
  0xd4   : > { %s2509_s9 = scalar_lea.vmem %s2508_s22, 256  ;;  %p2510_p6 = scmp.lt.s32.totalorder %s3188_s4, %s2508_s22 }
  0xd5   : > { %p2505_p13 = pnand %p2503_p11, %p3198_p12  ;;  %p2511_p8 = scmp.lt.s32.totalorder %s2509_s9, %s2502_s21 }
  0xd7   : > { %p2506_p2 = pneg %p2505_p13  ;;  %p2512_p4 = por %p2511_p8, %p2510_p6 }
  0xd9   : > { %p2513_p7 = pnand %p2512_p4, %p2506_p2 }
  0xdb   : > { %2516 = shalt.err (!%p2513_p7)
}
  0xdc   : > { %2208 = dma.hbm_to_vmem [thread:$0]  (!%p3176_p3), %s3185_s14, 128, %s3188_s4, %s3192_s16  }
  0xdd   : > { %s2871_s5 = smov [#allocation17]   ;;  %s2872_s27 = smov [#allocation20]  }
  0xde   : > { %s451_s11 = sshll.u32 %s2871_s5, 4  ;;  %s475_s1 = sshll.u32 %s2872_s27, 4  ;;  %s452_s11 = int_to_ptr.vmem [resolvable:$true] %s451_s11  ;;  %s476_s1 = int_to_ptr.vmem [resolvable:$true] %s475_s1 }
  0xdf   : > { %s3750_s6 = sld [smem:[#allocation52_spill]]  ;;  %p3751_p8 = scmp.ne.s32.totalorder %s3734_s3, 0 }
  0xe5   : > { %s2517_s22 = scalar_lea.hbm %s3750_s6, 256 }
  0xe6   : > { %p2518_p6 = scmp.ne.s32.totalorder %s3750_s6, %s2517_s22  ;;  %p2524_p1 = scmp.lt.u32.totalorder %s2517_s22, %s3750_s6 }
  0xe8   : > { %p2520_p2 = pnand %p2518_p6, %p3751_p8 }
  0xea   : > { %p2521_p5 = pneg %p2520_p2 }
  0xec   : > { %p2526_p0 = pnand %p2524_p1, %p2521_p5 }
  0xee   : > { %2529 = shalt.err (!%p2526_p0)
}
  0xef   : > { %s2530_s4 = scalar_lea.vmem %s452_s11, 256  ;;  %p2538_p13 = scmp.lt.s32.totalorder %s452_s11, %s452_s11 }
  0xf0   : > { %p2531_p9 = scmp.ne.s32.totalorder %s452_s11, %s2530_s4  ;;  %p2539_p4 = scmp.lt.s32.totalorder %s2530_s4, %s2530_s4 }
  0xf2   : > { %p2533_p10 = pnand %p2531_p9, %p3751_p8  ;;  %p2540_p7 = por %p2539_p4, %p2538_p13 }
  0xf4   : > { %p2534_p11 = pneg %p2533_p10 }
  0xf6   : > { %p2541_p3 = pnand %p2540_p7, %p2534_p11 }
  0xf8   : > { %2544 = shalt.err (!%p2541_p3)
}
  0xf9   : > { %p3752_p6 = scmp.ne.s32.totalorder %s3732_s23, 0  ;;  %s3753_s14 = smov 4  }
  0xfa   : > { %s3754_s20 = smov 64   ;;  %s2545_s26 = scalar_lea.hbm %s3680_s8, 256 }
  0xfb   : > { %2180 = dma.hbm_to_vmem [thread:$0]  (!%p3752_p6), %s3750_s6, 256, %s452_s11, [#allocation16], %s3754_s20, %s3754_s20, %s3753_s14  }
  0xfc   : > { %p2546_p2 = scmp.ne.s32.totalorder %s3680_s8, %s2545_s26  ;;  %p2552_p1 = scmp.lt.u32.totalorder %s2545_s26, %s3680_s8 }
  0xfe   : > { %p2548_p3 = pnand %p2546_p2, %p3751_p8 }
 0x100   : > { %p2549_p5 = pneg %p2548_p3 }
 0x102   : > { %p2554_p0 = pnand %p2552_p1, %p2549_p5 }
 0x104   : > { %2557 = shalt.err (!%p2554_p0)
}
 0x105   : > { %s2558_s17 = scalar_lea.vmem %s476_s1, 256  ;;  %p2566_p13 = scmp.lt.s32.totalorder %s476_s1, %s476_s1 }
 0x106   : > { %p2559_p9 = scmp.ne.s32.totalorder %s476_s1, %s2558_s17  ;;  %p2567_p4 = scmp.lt.s32.totalorder %s2558_s17, %s2558_s17 }
 0x108   : > { %p2561_p10 = pnand %p2559_p9, %p3751_p8  ;;  %p2568_p7 = por %p2567_p4, %p2566_p13 }
 0x10a   : > { %p2562_p11 = pneg %p2561_p10 }
 0x10c   : > { %p2569_p12 = pnand %p2568_p7, %p2562_p11 }
 0x10e   : > { %2572 = shalt.err (!%p2569_p12)
}
 0x10f   : > { %2186 = dma.hbm_to_vmem [thread:$0]  (!%p3752_p6), %s3680_s8, 256, %s476_s1, [#allocation19], %s3754_s20, %s3754_s20, %s3753_s14  }
 0x110   : > { %s2873_s5 = smov [#allocation23]   ;;  %s2874_s26 = smov [#allocation26]  }
 0x111   : > { %s499_s27 = sshll.u32 %s2873_s5, 4  ;;  %s524_s22 = sshll.u32 %s2874_s26, 4  ;;  %s500_s27 = int_to_ptr.vmem [resolvable:$true] %s499_s27  ;;  %s525_s22 = int_to_ptr.vmem [resolvable:$true] %s524_s22 }
 0x112   : > { %s2573_s4 = scalar_lea.hbm %s3682_s10, 256 }
 0x113   : > { %p2574_p12 = scmp.ne.s32.totalorder %s3682_s10, %s2573_s4  ;;  %p2580_p5 = scmp.lt.u32.totalorder %s2573_s4, %s3682_s10 }
 0x115   : > { %p2576_p2 = pnand %p2574_p12, %p3751_p8 }
 0x117   : > { %p2577_p3 = pneg %p2576_p2 }
 0x119   : > { %p2582_p1 = pnand %p2580_p5, %p2577_p3 }
 0x11b   : > { %2585 = shalt.err (!%p2582_p1)
}
 0x11c   : > { %s2586_s1 = scalar_lea.vmem %s500_s27, 256  ;;  %p2594_p11 = scmp.lt.s32.totalorder %s500_s27, %s500_s27 }
 0x11d   : > { %p2587_p0 = scmp.ne.s32.totalorder %s500_s27, %s2586_s1  ;;  %p2595_p13 = scmp.lt.s32.totalorder %s2586_s1, %s2586_s1 }
 0x11f   : > { %p2589_p9 = pnand %p2587_p0, %p3751_p8  ;;  %p2596_p4 = por %p2595_p13, %p2594_p11 }
 0x121   : > { %p2590_p10 = pneg %p2589_p9 }
 0x123   : > { %p2597_p7 = pnand %p2596_p4, %p2590_p10 }
 0x125   : > { %2600 = shalt.err (!%p2597_p7)
}
 0x126   : > { %2192 = dma.hbm_to_vmem [thread:$0]  (!%p3752_p6), %s3682_s10, 256, %s500_s27, [#allocation22], %s3754_s20, %s3754_s20, %s3753_s14  }
 0x127   : > { %s3755_s26 = sld [smem:[#allocation56_spill]] }
 0x12d   : > { %s2601_s21 = scalar_lea.hbm %s3755_s26, 16 }
 0x12e   : > { %p2602_p12 = scmp.ne.s32.totalorder %s3755_s26, %s2601_s21  ;;  %p2608_p5 = scmp.lt.u32.totalorder %s2601_s21, %s3755_s26 }
 0x130   : > { %p2604_p2 = pnand %p2602_p12, %p3751_p8 }
 0x132   : > { %p2605_p3 = pneg %p2604_p2 }
 0x134   : > { %p2610_p1 = pnand %p2608_p5, %p2605_p3 }
 0x136   : > { %2613 = shalt.err (!%p2610_p1)
}
 0x137   : > { %s2614_s1 = scalar_lea.vmem %s525_s22, 16  ;;  %s2621_s14 = scalar_lea.vmem %s525_s22, 32 }
 0x138   : > { %p2615_p0 = scmp.ne.s32.totalorder %s525_s22, %s2614_s1  ;;  %p2622_p11 = scmp.lt.s32.totalorder %s525_s22, %s525_s22 }
 0x139   : > { %p2623_p13 = scmp.lt.s32.totalorder %s2621_s14, %s2614_s1 }
 0x13a   : > { %p2617_p9 = pnand %p2615_p0, %p3751_p8 }
 0x13b   : > { %p2624_p4 = por %p2623_p13, %p2622_p11 }
 0x13c   : > { %p2618_p10 = pneg %p2617_p9 }
 0x13e   : > { %p2625_p7 = pnand %p2624_p4, %p2618_p10 }
 0x140   : > { %2628 = shalt.err (!%p2625_p7)
}
 0x141   : > { %2198 = dma.hbm_to_vmem [thread:$0]  (!%p3752_p6), %s3755_s26, 16, %s525_s22, [#allocation25]  }
 0x142   : > { %s2875_s6 = smov [#allocation27]   ;;  %s3756_s21 = sld [smem:[#allocation57_spill]] }
 0x143   : > { %s535_s2 = sshll.u32 %s2875_s6, 4  ;;  %s536_s2 = int_to_ptr.vmem [resolvable:$true] %s535_s2 }
 0x148   : > { %s2629_s9 = scalar_lea.hbm %s3756_s21, 16 }
 0x149   : > { %p2630_p12 = scmp.ne.s32.totalorder %s3756_s21, %s2629_s9  ;;  %p2636_p5 = scmp.lt.u32.totalorder %s2629_s9, %s3756_s21 }
 0x14b   : > { %p2632_p2 = pnand %p2630_p12, %p3751_p8 }
 0x14d   : > { %p2633_p3 = pneg %p2632_p2 }
 0x14f   : > { %p2638_p1 = pnand %p2636_p5, %p2633_p3 }
 0x151   : > { %2641 = shalt.err (!%p2638_p1)
}
 0x152   : > { %s2642_s22 = scalar_lea.vmem %s536_s2, 16  ;;  %s2649_s14 = scalar_lea.vmem %s536_s2, 32 }
 0x153   : > { %p2643_p0 = scmp.ne.s32.totalorder %s536_s2, %s2642_s22  ;;  %p2650_p11 = scmp.lt.s32.totalorder %s536_s2, %s536_s2 }
 0x154   : > { %p2651_p13 = scmp.lt.s32.totalorder %s2649_s14, %s2642_s22 }
 0x155   : > { %p2645_p9 = pnand %p2643_p0, %p3751_p8 }
 0x156   : > { %p2652_p4 = por %p2651_p13, %p2650_p11 }
 0x157   : > { %p2646_p10 = pneg %p2645_p9 }
 0x159   : > { %p2653_p7 = pnand %p2652_p4, %p2646_p10 }
 0x15b   : > { %2656 = shalt.err (!%p2653_p7)
}
 0x15c   : > { %2201 = dma.hbm_to_vmem [thread:$0]  (!%p3752_p6), %s3756_s21, 16, %s536_s2, [#allocation28]  }
 0x15d   : > { %s3757_s25 = sld [smem:[#allocation46_spill]]  ;;  %s550_s9 = scalar_lea.vmem [#allocation6], %s3169_s28 }
 0x15e   : > { %s558_s4 = sshll.u32 %s550_s9, 4  ;;  %s3758_s23 = sand.u32 1, %s2849_s15   ;;  %s559_s4 = int_to_ptr.vmem [resolvable:$true] %s558_s4 }
 0x15f   : > { %s547_s17 = scalar_lea.sflag [#allocation7], %s3758_s23  ;;  %p3759_p12 = scmp.ne.s32.totalorder %s3749_s7, 0 }
 0x163   : > { %s3325_s5 = scalar_lea.hbm %s3757_s25, %s3172_s12  ;;  %s2662_s22 = scalar_lea.hbm %s3757_s25, 256 }
 0x164   : > { %s2657_s11 = scalar_lea.hbm %s3325_s5, 128  ;;  %p2663_p6 = scmp.lt.u32.totalorder %s3325_s5, %s3757_s25 }
 0x165   : > { %p2658_p8 = scmp.ne.s32.totalorder %s3325_s5, %s2657_s11  ;;  %p2664_p5 = scmp.lt.u32.totalorder %s2662_s22, %s2657_s11 }
 0x166   : > { %p2666_p0 = scmp.lt.u32.totalorder %s2657_s11, %s3325_s5 }
 0x167   : > { %p2660_p2 = pnand %p2658_p8, %p3759_p12  ;;  %p2665_p1 = por %p2664_p5, %p2663_p6 }
 0x169   : > { %p2661_p3 = pneg %p2660_p2  ;;  %p2667_p9 = por %p2666_p0, %p2665_p1 }
 0x16b   : > { %p2668_p10 = pnand %p2667_p9, %p2661_p3 }
 0x16d   : > { %2671 = shalt.err (!%p2668_p10)
}
 0x16e   : > { %s2672_s27 = scalar_lea.vmem %s559_s4, 128  ;;  %s2876_s6 = smov [#allocation6]  }
 0x16f   : > { %p2673_p11 = scmp.ne.s32.totalorder %s559_s4, %s2672_s27  ;;  %s2677_s3 = sshll.u32 %s2876_s6, 4  ;;  %s2678_s3 = int_to_ptr.vmem [resolvable:$false] %s2677_s3 }
 0x170   : > { %s2679_s9 = scalar_lea.vmem %s2678_s3, 256  ;;  %p2680_p7 = scmp.lt.s32.totalorder %s559_s4, %s2678_s3 }
 0x171   : > { %p2675_p13 = pnand %p2673_p11, %p3759_p12  ;;  %p2681_p8 = scmp.lt.s32.totalorder %s2679_s9, %s2672_s27 }
 0x173   : > { %p2676_p4 = pneg %p2675_p13  ;;  %p2682_p2 = por %p2681_p8, %p2680_p7 }
 0x175   : > { %p2683_p5 = pnand %p2682_p2, %p2676_p4 }
 0x177   : > { %2686 = shalt.err (!%p2683_p5)
}
 0x178   : > { %p3760_p6 = scmp.ne.s32.totalorder %s3747_s13, 0  ;;  %s3761_s2 = sld [smem:[#allocation48_spill]] }
 0x179   : > { %s588_s22 = scalar_lea.vmem [#allocation11], %s3169_s28 }
 0x17a   : > { %2205 = dma.hbm_to_vmem [thread:$0]  (!%p3760_p6), %s3325_s5, 128, %s559_s4, %s547_s17  }
 0x17b   : > { %s596_s14 = sshll.u32 %s588_s22, 4  ;;  %s597_s14 = int_to_ptr.vmem [resolvable:$true] %s596_s14 }
 0x17e   : > { %s3351_s1 = scalar_lea.hbm %s3761_s2, %s3172_s12  ;;  %s2692_s5 = scalar_lea.hbm %s3761_s2, 256 }
 0x17f   : > { %s2687_s20 = scalar_lea.hbm %s3351_s1, 128  ;;  %p2693_p9 = scmp.lt.u32.totalorder %s3351_s1, %s3761_s2 }
 0x180   : > { %p2688_p3 = scmp.ne.s32.totalorder %s3351_s1, %s2687_s20  ;;  %p2694_p10 = scmp.lt.u32.totalorder %s2692_s5, %s2687_s20 }
 0x181   : > { %p2696_p13 = scmp.lt.u32.totalorder %s2687_s20, %s3351_s1 }
 0x182   : > { %p2690_p1 = pnand %p2688_p3, %p3759_p12  ;;  %p2695_p11 = por %p2694_p10, %p2693_p9 }
 0x184   : > { %p2691_p0 = pneg %p2690_p1  ;;  %p2697_p4 = por %p2696_p13, %p2695_p11 }
 0x186   : > { %p2698_p7 = pnand %p2697_p4, %p2691_p0 }
 0x188   : > { %2701 = shalt.err (!%p2698_p7)
}
 0x189   : > { %s2702_s3 = scalar_lea.vmem %s597_s14, 128  ;;  %s2877_s9 = smov [#allocation11]  }
 0x18a   : > { %p2703_p8 = scmp.ne.s32.totalorder %s597_s14, %s2702_s3  ;;  %s2707_s23 = sshll.u32 %s2877_s9, 4  ;;  %s2708_s23 = int_to_ptr.vmem [resolvable:$false] %s2707_s23 }
 0x18b   : > { %s2709_s11 = scalar_lea.vmem %s2708_s23, 256  ;;  %p2710_p3 = scmp.lt.s32.totalorder %s597_s14, %s2708_s23 }
 0x18c   : > { %p2705_p2 = pnand %p2703_p8, %p3759_p12  ;;  %p2711_p1 = scmp.lt.s32.totalorder %s2709_s11, %s2702_s3 }
 0x18e   : > { %p2706_p5 = pneg %p2705_p2  ;;  %p2712_p6 = por %p2711_p1, %p2710_p3 }
 0x190   : > { %p2713_p9 = pnand %p2712_p6, %p2706_p5 }
 0x192   : > { %2716 = shalt.err (!%p2713_p9)
}
 0x193   : > { %p3762_p10 = scmp.ne.s32.totalorder %s3747_s13, 0  ;;  %s3763_s27 = sld [smem:[#allocation49_spill]] }
 0x194   : > { %s607_s5 = scalar_lea.vmem [#allocation12], %s3169_s28  ;;  %s3764_s17 = sand.u32 1, %s2861_s18  }
 0x195   : > { %2211 = dma.hbm_to_vmem [thread:$0]  (!%p3762_p10), %s3351_s1, 128, %s597_s14, %s3192_s16  }
 0x196   : > { %s615_s4 = sshll.u32 %s607_s5, 4  ;;  %s604_s3 = scalar_lea.sflag [#allocation13], %s3764_s17  ;;  %s616_s4 = int_to_ptr.vmem [resolvable:$true] %s615_s4 }
 0x199   : > { %s3376_s6 = scalar_lea.hbm %s3763_s27, %s3172_s12  ;;  %s2722_s14 = scalar_lea.hbm %s3763_s27, 256 }
 0x19a   : > { %s2717_s9 = scalar_lea.hbm %s3376_s6, 128  ;;  %p2723_p13 = scmp.lt.u32.totalorder %s3376_s6, %s3763_s27 }
 0x19b   : > { %p2718_p6 = scmp.ne.s32.totalorder %s3376_s6, %s2717_s9  ;;  %p2724_p4 = scmp.lt.u32.totalorder %s2722_s14, %s2717_s9 }
 0x19c   : > { %p2726_p8 = scmp.lt.u32.totalorder %s2717_s9, %s3376_s6 }
 0x19d   : > { %p2720_p0 = pnand %p2718_p6, %p3759_p12  ;;  %p2725_p7 = por %p2724_p4, %p2723_p13 }
 0x19f   : > { %p2721_p11 = pneg %p2720_p0  ;;  %p2727_p2 = por %p2726_p8, %p2725_p7 }
 0x1a1   : > { %p2728_p5 = pnand %p2727_p2, %p2721_p11 }
 0x1a3   : > { %2731 = shalt.err (!%p2728_p5)
}
 0x1a4   : > { %s2732_s28 = scalar_lea.vmem %s616_s4, 128  ;;  %s2878_s11 = smov [#allocation12]  }
 0x1a5   : > { %p2733_p3 = scmp.ne.s32.totalorder %s616_s4, %s2732_s28  ;;  %s2737_s22 = sshll.u32 %s2878_s11, 4  ;;  %s2738_s22 = int_to_ptr.vmem [resolvable:$false] %s2737_s22 }
 0x1a6   : > { %s2739_s20 = scalar_lea.vmem %s2738_s22, 256  ;;  %p2740_p6 = scmp.lt.s32.totalorder %s616_s4, %s2738_s22 }
 0x1a7   : > { %p2735_p1 = pnand %p2733_p3, %p3759_p12  ;;  %p2741_p0 = scmp.lt.s32.totalorder %s2739_s20, %s2732_s28 }
 0x1a9   : > { %p2736_p9 = pneg %p2735_p1  ;;  %p2742_p10 = por %p2741_p0, %p2740_p6 }
 0x1ab   : > { %p2743_p4 = pnand %p2742_p10, %p2736_p9 }
 0x1ad   : > { %2746 = shalt.err (!%p2743_p4)
}
 0x1ae   : > { %p3765_p13 = scmp.ne.s32.totalorder %s3747_s13, 0  ;;  %s3766_s5 = sld [smem:[#allocation42_spill]] }
 0x1b0   : > { %2214 = dma.hbm_to_vmem [thread:$0]  (!%p3765_p13), %s3376_s6, 128, %s616_s4, %s604_s3  }
 0x1b4   : > { %p3767_p11 = scmp.ne.s32.totalorder %s3766_s5, 0 }
 0x1b5   : > { %s3401_s7 = sand.u32 (!%p3767_p11), 1, %s2845_s30   ;;  %p3768_p12 = scmp.ne.s32.totalorder (!%p3767_p11), %s3742_s24, 0 }
 0x1b6   : > { %624 = sbr.rel (%p3767_p11) target bundleno = 2292 (0x8f4), region = 76  ;;  %s3404_s17 = sshll.u32 (!%p3767_p11), %s3401_s7, 3 }
 0x1b7   : > { %s627_s9 = scalar_lea.sflag (!%p3767_p11), [#allocation7], %s3401_s7  ;;  %s630_s16 = scalar_lea.vmem (!%p3767_p11), [#allocation6], %s3404_s17 }
 0x1bd   : > { %2800 = dma.done.wait (%p3768_p12), %s627_s9, 128  }
 0x1be   : > { %2802 = vsyncadd (%p3768_p12), %s627_s9, 4294967168  ;;  %s635_s13 = sand.u32 1, %s2996_s19   ;;  %s639_s4 = scalar_lea.vmem [#allocation9], %s3404_s17 }
 0x1bf   : > { %s636_s6 = scalar_lea.sflag [#allocation10], %s635_s13 }
 0x1c0   : > { %2804 = dma.done.wait (%p3768_p12), %s636_s6, 256  }
 0x1c1   : > { %2806 = vsyncadd (%p3768_p12), %s636_s6, 4294967040  ;;  %s648_s3 = scalar_lea.vmem [#allocation11], %s3404_s17  ;;  %s654_s1 = scalar_lea.sflag [#allocation13], %s635_s13 }
 0x1c2   : > { %s657_s14 = scalar_lea.vmem [#allocation12], %s3404_s17 }
 0x1c3   : > { %2808 = dma.done.wait (%p3768_p12), %s654_s1, 128  }
 0x1c4   : > { %2810 = vsyncadd (%p3768_p12), %s654_s1, 4294967168  ;;  %p3769_p10 = scmp.eq.s32.totalorder %s2996_s19, 0 }
 0x1c6   : > { %2812 = dma.done.wait (%p3769_p10), [#allocation13], 256   ;;  %p3770_p7 = pmov %p3769_p10 }
 0x1c8   : > { %2814 = vsyncadd (%p3770_p7), [#allocation13], 4294967040  ;;  %p3771_p8 = pmov %p3770_p7 }
 0x1c9   : > { %p3772_p2 = pmov %p3770_p7 }
 0x1ca   : > { %2816 = dma.done.wait (%p3771_p8), [#allocation16], 272  }
 0x1cb   : > { %2818 = vsyncadd (%p3772_p2), [#allocation16], 4294967024  ;;  %p3773_p5 = pmov %p3772_p2 }
 0x1cc   : > { %p3774_p3 = pmov %p3772_p2 }
 0x1cd   : > { %2820 = dma.done.wait (%p3773_p5), [#allocation19], 272  }
 0x1ce   : > { %2822 = vsyncadd (%p3774_p3), [#allocation19], 4294967024  ;;  %p3775_p1 = pmov %p3772_p2 }
 0x1d0   : > { %2824 = dma.done.wait (%p3775_p1), [#allocation22], 272   ;;  %p3776_p9 = pmov %p3775_p1 }
 0x1d1   : > { %p3777_p6 = pmov %p3775_p1 }
 0x1d2   : > { %2826 = vsyncadd (%p3776_p9), [#allocation22], 4294967024 }
 0x1d3   : > { %2828 = dma.done.wait (%p3777_p6), [#allocation25], 32   ;;  %p3778_p0 = pmov %p3775_p1 }
 0x1d5   : > { %2830 = vsyncadd (%p3778_p0), [#allocation25], 4294967264  ;;  %p3779_p4 = pmov %p3778_p0 }
 0x1d6   : > { %p3780_p13 = pmov %p3778_p0 }
 0x1d7   : > { %2832 = dma.done.wait (%p3779_p4), [#allocation28], 16  }
 0x1d8   : > { %2834 = vsyncadd (%p3780_p13), [#allocation28], 4294967280  ;;  %v2879_v0 = vmov 0.0   ;;  %vm2880_vm0 = vmmov 0   ;;  %v2313_v1 = vld [vmem:[#allocation14] sm:$0xff]   ;;  %v2314_v2 = vld [vmem:[#allocation17] sm:$0xff]  }
 0x1d9   : > { %2041 = vmatprep.subr.bf16.mxu0 %v2879_v0  ;;  %2049 = vmatprep.subr.bf16.mxu1 %v2879_v0  ;;  %v2315_v3 = vld [vmem:[#allocation14 + $0x8] sm:$0xff]   ;;  %v2316_v4 = vld [vmem:[#allocation17 + $0x8] sm:$0xff]   ;;  %vm789_vm1 = vcmask 261120   ;;  %vm843_vm2 = vcmask 64512   ;;  %v1983_v13 = vld [vmem:[#allocation15] ss:$0 sm:$0xff] }
 0x1da   : > { %2045 = vmatprep.mubr.msk.bf16.mxu0 %vm2880_vm0, %v2879_v0  ;;  %2053 = vmatprep.mubr.msk.bf16.mxu1 %vm2880_vm0, %v2879_v0  ;;  %v3458_v5 = vld [vmem:[%s630_s16] sm:$0xff]  ;;  %v763_v6 = vld [vmem:[%s639_s4] sm:$0xff]  ;;  %844 = vst.msk [vmem:[#allocation3] sm:$0xff] %vm843_vm2, %v2879_v0  ;;  %845 = vst.msk [vmem:[#allocation3 + $0x8] sm:$0xff] %vm843_vm2, %v2879_v0  ;;  %s2881_s19 = smov 112   ;;  %s2882_s24 = smov 120  }
 0x1db   : > { %2042 = vmatpush3.bf16.msra.mxu0 %v2313_v1  ;;  %2050 = vmatpush3.bf16.msra.mxu1 %v2314_v2  ;;  %v848_v7 = vld [vmem:[%s648_s3] sm:$0xff]  ;;  %v764_v8 = vadd.f32 %v763_v6, %v3458_v5  ;;  %v849_v9 = vld [vmem:[%s657_s14] sm:$0xff]  ;;  %846 = vst.msk [vmem:[#allocation3 + $0x10] sm:$0xff] %vm843_vm2, %v2879_v0  ;;  %847 = vst.msk [vmem:[#allocation3 + $0x18] sm:$0xff] %vm843_vm2, %v2879_v0  ;;  %s2883_s12 = smov 104   ;;  %vm834_vm3 = vcmask 7168  }
 0x1dc   : > { %2043 = vmatprep.subr.bf16.mxu0 %v2879_v0  ;;  %2051 = vmatprep.subr.bf16.mxu1 %v2879_v0  ;;  %v850_v10 = vadd.f32 %v849_v9, %v848_v7  ;;  %v1987_v14 = vld [vmem:[#allocation18] ss:$0 sm:$0xff]  ;;  %v2317_v29 = vld [vmem:[#allocation20] sm:$0xff]   ;;  %v2318_v30 = vld [vmem:[#allocation20 + $0x8] sm:$0xff]   ;;  %v852_v31 = vpack.c.bf16 %v848_v7, %v848_v7  ;;  %v2884_v46 = vmov -inf   ;;  %839 = vst.msk [vmem:[#allocation5] sm:$0xff] %vm834_vm3, %v2879_v0 }
 0x1dd   : > { %v765_v11 = vpack.c.bf16 %v764_v8, %v764_v8  ;;  %835 = vst.msk [vmem:[#allocation4] sm:$0xff] %vm834_vm3, %v2884_v46  ;;  %836 = vst.msk [vmem:[#allocation4 + $0x8] sm:$0xff] %vm834_vm3, %v2884_v46  ;;  %v2885_v47 = vmov 0   ;;  %vm1072_vm4 = vcmask 1043456   ;;  %s2886_s23 = smov 8   ;;  %s2887_s28 = smov 16  }
 0x1de   : > { %v851_v12 = vpack.c.bf16 %v850_v10, %v850_v10  ;;  %837 = vst.msk [vmem:[#allocation4 + $0x10] sm:$0xff] %vm834_vm3, %v2884_v46  ;;  %838 = vst.msk [vmem:[#allocation4 + $0x18] sm:$0xff] %vm834_vm3, %v2884_v46  ;;  %2311 = vset.pattern.permute.xlu1 %v2885_v47  ;;  %2312 = vset.pattern.permute.xlu0 %v2885_v47  ;;  %s2888_s11 = smov 24   ;;  %vm1579_vm5 = vcmask 130048   ;;  %vm1581_vm6 = vcmask 195584   ;;  %s3781_s22 = sld [smem:[#allocation40_spill]] }
 0x1df   : > { %2044 = vmatpush3.bf16.msra.mxu0 %v2315_v3  ;;  %2052 = vmatpush3.bf16.msra.mxu1 %v2316_v4  ;;  %840 = vst.msk [vmem:[#allocation5 + $0x8] sm:$0xff] %vm834_vm3, %v2879_v0  ;;  %841 = vst.msk [vmem:[#allocation5 + $0x10] sm:$0xff] %vm834_vm3, %v2879_v0  ;;  %v1991_v4 = vld [vmem:[#allocation21] ss:$0 sm:$0xff]  ;;  %s756_s5 = scalar_lea.vmem [#allocation29], %s3404_s17  ;;  %s3782_s6 = sld [smem:[#allocation58_spill]] }
 0x1e0   : > { %2057 = vmatprep.subr.bf16.mxu0 %v2879_v0  ;;  %2065 = vmatprep.subr.bf16.mxu1 %v2879_v0  ;;  %842 = vst.msk [vmem:[#allocation5 + $0x18] sm:$0xff] %vm834_vm3, %v2879_v0  ;;  %s1698_s9 = sshll.u32 %s756_s5, 4  ;;  %s1684_s3 = scalar_lea.sflag [#allocation8], %s3401_s7  ;;  %s3624_s9 = int_to_ptr.vmem [resolvable:$true] %s1698_s9 }
 0x1e1   : > { %s2747_s1 = scalar_lea.vmem %s3624_s9, 128  ;;  %p3783_p12 = scmp.ne.s32.totalorder %s3743_s0, 0 }
 0x1e2   : > { %2046 = vmatmul.mubr.msk.bf16.vlgmr.msra.gmra.mrb[0].mxu0 %vm789_vm1, %v765_v11  ;;  %2054 = vmatmul.mubr.msk.bf16.vlgmr.msra.gmra.mrb[0].mxu1 %vm789_vm1, %v851_v12  ;;  %p2748_p11 = scmp.ne.s32.totalorder %s3624_s9, %s2747_s1  ;;  %s2889_s17 = smov [#allocation29]  }
 0x1e3   : > { %2061 = vmatprep.mubr.msk.bf16.mxu0 %vm2880_vm0, %v2879_v0  ;;  %2067 = vmatprep.mubr.msk.bf16.mxu1 %vm2880_vm0, %v2879_v0  ;;  %s2751_s14 = sshll.u32 %s2889_s17, 4  ;;  %s2752_s14 = int_to_ptr.vmem [resolvable:$false] %s2751_s14 }
 0x1e4   : > { %2058 = vmatpush3.bf16.msra.mxu0 %v2317_v29  ;;  %v3543_v63 = vld [vmem:[#allocation4] sm:$0xff]  ;;  %s2010_s20 = sshll.u32 %s3781_s22, 7  ;;  %p2749_p10 = pnand %p2748_p11, %p3783_p12 }
 0x1e5   : > { %2059 = vmatprep.subr.bf16.mxu0 %v2879_v0  ;;  %s3622_s4 = scalar_lea.hbm %s3782_s6, %s2010_s20  ;;  %p2754_p8 = scmp.lt.s32.totalorder %s3624_s9, %s2752_s14 }
 0x1e6   : > { %p2750_p7 = pneg %p2749_p10 }
 0x1e8   : > { %2060 = vmatpush3.bf16.msra.mxu0 %v2318_v30 }
 0x1e9   : > { %2071 = vmatprep.subr.bf16.mxu0 %v2879_v0 }
 0x1eb   : > { %2062 = vmatmul.mubr.msk.bf16.vlgmr.msra.gmra.mrb[4].mxu0 %vm789_vm1, %v852_v31 }
 0x1ec   : > { %2073 = vmatprep.mubr.msk.bf16.mxu0 %vm2880_vm0, %v2879_v0 }
 0x2b5   : > { %v827_v15 = vpop.f32.mrb[0].mxu0  ;;  %v914_v17 = vpop.f32.mrb[0].mxu1 }
 0x2b6   : > { %v828_v16 = vadd.f32 %v1983_v13, %v827_v15  ;;  %v2047_v18 = vpop.f32.mrb[1].mxu0  ;;  %v915_v19 = vadd.f32 %v1987_v14, %v914_v17  ;;  %v2055_v20 = vpop.f32.mrb[1].mxu1  ;;  %v1172_v13 = vld [vmem:[#allocation4 + $0x8] sm:$0xff]  ;;  %v3556_v17 = vld [vmem:[#allocation4 + $0x10] sm:$0xff] }
 0x2b7   : > { %v830_v21 = vpop.f32.mrb[2].mxu0  ;;  %v917_v22 = vpop.f32.mrb[2].mxu1 }
 0x2b8   : > { %833 = vst.msk [vmem:[#allocation2] sm:$0xff] %vm789_vm1, %v828_v16  ;;  %v2048_v23 = vpop.f32.mrb[3].mxu0  ;;  %v988_v24 = vpack.c.bf16 %v915_v19, %v915_v19  ;;  %v2056_v25 = vpop.f32.mrb[3].mxu1  ;;  %v3566_v21 = vld [vmem:[#allocation4 + $0x18] sm:$0xff] }
 0x2ba   : > { %1259 = vrot.lane.b32.xlu1 %v988_v24, %s2881_s19  ;;  %1123 = vrot.lane.b32.xlu0 %v988_v24, %s2882_s24  ;;  %v995_v26 = vsel %vm843_vm2, %v988_v24, 0 }
 0x2bb   : > { %2066 = vmatpush3.bf16.xpose.msra.mxu1 %v995_v26 }
 0x2bc   : > { %2077 = vmatprep.subr.bf16.mxu1 %v2879_v0 }
 0x2be   : > { %v980_v6 = vpop.f32.mrb[4].mxu0 }
 0x2bf   : > { %v986_v27 = vld [vmem:[#allocation2] sm:$0xff]  ;;  %v981_v7 = vadd.f32 %v1991_v4, %v980_v6  ;;  %v2063_v8 = vpop.f32.mrb[5].mxu0  ;;  %v1189_v6 = vld [vmem:[#allocation5 + $0x8] sm:$0xff] }
 0x2c0   : > { %v987_v28 = vpack.c.bf16 %v986_v27, %v986_v27  ;;  %v983_v9 = vpop.f32.mrb[6].mxu0 }
 0x2c1   : > { %v989_v10 = vpack.c.bf16 %v981_v7, %v981_v7  ;;  %v2064_v11 = vpop.f32.mrb[7].mxu0 }
 0x2c2   : > { %1257 = vrot.lane.b32.xlu1 %v987_v28, %s2881_s19  ;;  %1120 = vrot.lane.b32.xlu0 %v987_v28, %s2882_s24  ;;  %v1325_v11 = vld [vmem:[#allocation5 + $0x10] sm:$0xff] }
 0x2c3   : > { %2068 = vmatmul.mubr.msk.bf16.vlgmr.msra.gmra.mrb[4].mxu1 %vm843_vm2, %v987_v28  ;;  %v1074_v12 = vsel %vm1072_vm4, %v989_v10, 0 }
 0x2c4   : > { %2079 = vmatprep.mubr.msk.bf16.mxu1 %vm2880_vm0, %v2879_v0  ;;  %2072 = vmatpush3.bf16.msra.mxu0 %v1074_v12 }
 0x2c5   : > { %2083 = vmatprep.subr.bf16.mxu0 %v2879_v0 }
 0x2c6   : > { %1392 = vrot.lane.b32.xlu1 %v987_v28, %s2883_s12  ;;  %1394 = vrot.lane.b32.xlu0 %v988_v24, %s2883_s12 }
 0x32c   : > { %v1124_v32 = vpop.permute.xlu0 %1123  ;;  %v1260_v34 = vpop.permute.xlu1 %1259 }
 0x32d   : > { %v1129_v33 = vsel %vm843_vm2, %v1124_v32, 0  ;;  %v1265_v36 = vsel %vm843_vm2, %v1260_v34, 0 }
 0x32e   : > { %2078 = vmatpush3.bf16.xpose.msra.mxu1 %v1129_v33 }
 0x32f   : > { %2089 = vmatprep.subr.bf16.mxu1 %v2879_v0 }
 0x334   : > { %v1121_v35 = vpop.permute.xlu0 %1120  ;;  %v1258_v38 = vpop.permute.xlu1 %1257 }
 0x335   : > { %2080 = vmatmul.mubr.msk.bf16.vlgmr.msra.gmra.mrb[8].mxu1 %vm843_vm2, %v1121_v35 }
 0x336   : > { %2090 = vmatpush3.bf16.xpose.msra.mxu1 %v1265_v36  ;;  %2091 = vmatprep.mubr.msk.bf16.mxu1 %vm2880_vm0, %v2879_v0 }
 0x337   : > { %2101 = vmatprep.subr.bf16.mxu1 %v2879_v0 }
 0x338   : > { %v1395_v37 = vpop.permute.xlu0 %1394  ;;  %v1393_v40 = vpop.permute.xlu1 %1392 }
 0x339   : > { %v1400_v39 = vsel %vm843_vm2, %v1395_v37, 0 }
 0x33d   : > { %2092 = vmatmul.mubr.msk.bf16.vlgmr.msra.gmra.mrb[12].mxu1 %vm843_vm2, %v1258_v38 }
 0x33e   : > { %2102 = vmatpush3.bf16.xpose.msra.mxu1 %v1400_v39  ;;  %2103 = vmatprep.mubr.msk.bf16.mxu1 %vm2880_vm0, %v2879_v0 }
 0x33f   : > { %2113 = vmatprep.subr.bf16.mxu1 %v2879_v0 }
 0x345   : > { %2104 = vmatmul.mubr.msk.bf16.vlgmr.msra.gmra.mrb[16].mxu1 %vm843_vm2, %v1393_v40 }
 0x346   : > { %2117 = vmatprep.mubr.msk.bf16.mxu1 %vm2880_vm0, %v2879_v0 }
 0x396   : > { %v3515_v41 = vpop.f32.mrb[4].mxu1 }
 0x397   : > { %v2069_v42 = vpop.f32.mrb[5].mxu1  ;;  %v1038_v43 = vsel %vm843_vm2, %v3515_v41, -inf }
 0x398   : > { %1039 = vmax.xlane.f32.xlu0 %v1038_v43  ;;  %v1034_v44 = vpop.f32.mrb[6].mxu1 }
 0x399   : > { %v2070_v45 = vpop.f32.mrb[7].mxu1 }
 0x408   : > { %v3531_v48 = vpop.f32.mrb[8].mxu1 }
 0x409   : > { %v2081_v49 = vpop.f32.mrb[9].mxu1  ;;  %v1173_v50 = vsel %vm843_vm2, %v3531_v48, -inf }
 0x40a   : > { %1174 = vmax.xlane.f32.xlu1 %v1173_v50  ;;  %v1168_v51 = vpop.f32.mrb[10].mxu1 }
 0x40b   : > { %v2082_v52 = vpop.f32.mrb[11].mxu1 }
 0x410   : > { %v3535_v53 = vpop.f32.mrb[12].mxu1 }
 0x411   : > { %v2093_v54 = vpop.f32.mrb[13].mxu1  ;;  %v1309_v55 = vsel %vm843_vm2, %v3535_v53, -inf }
 0x412   : > { %1310 = vmax.xlane.f32.xlu0 %v1309_v55  ;;  %v1304_v56 = vpop.f32.mrb[14].mxu1 }
 0x413   : > { %v2094_v57 = vpop.f32.mrb[15].mxu1 }
 0x418   : > { %v3539_v58 = vpop.f32.mrb[16].mxu1 }
 0x419   : > { %v2105_v59 = vpop.f32.mrb[17].mxu1  ;;  %v1444_v60 = vsel %vm843_vm2, %v3539_v58, -inf }
 0x41a   : > { %1445 = vmax.xlane.f32.xlu0 %v1444_v60  ;;  %v1439_v61 = vpop.f32.mrb[18].mxu1 }
 0x41b   : > { %v2106_v62 = vpop.f32.mrb[19].mxu1 }
 0x425   : > { %v1040_v1 = vpop.xlane.xlu0 %1039 }
 0x426   : > { %v3546_v2 = vmax.f32 %v3543_v63, %v1040_v1 }
 0x428   : > { %v1042_v3 = vsub.f32 %v3543_v63, %v3546_v2  ;;  %1118 = vst.msk [vmem:[#allocation4] sm:$0xff] %vm834_vm3, %v3546_v2  ;;  %1047 = vperm.xlu1 %2311, %v3546_v2  }
 0x497   : > { %v1175_v14 = vpop.xlane.xlu1 %1174 }
 0x498   : > { %v1176_v15 = vmax.f32 %v1172_v13, %v1175_v14 }
 0x49a   : > { %v1177_v16 = vsub.f32 %v1172_v13, %v1176_v15  ;;  %1256 = vst.msk [vmem:[#allocation4 + $0x8] sm:$0xff] %vm834_vm3, %v1176_v15  ;;  %1182 = vperm.xlu0 %2312, %v1176_v15  }
 0x49c   : > { %v1178_v52 = vmul.f32 1.442695, %v1177_v16  ;;  %v1460_v16 = vld [vmem:[#allocation5 + $0x18] sm:$0xff] }
 0x49f   : > { %v1311_v18 = vpop.xlane.xlu0 %1310 }
 0x4a0   : > { %v3559_v19 = vmax.f32 %v3556_v17, %v1311_v18 }
 0x4a2   : > { %v1313_v20 = vsub.f32 %v3556_v17, %v3559_v19  ;;  %1391 = vst.msk [vmem:[#allocation4 + $0x10] sm:$0xff] %vm834_vm3, %v3559_v19  ;;  %1318 = vperm.xlu1 %2311, %v3559_v19  }
 0x4a4   : > { %v1314_v55 = vmul.f32 1.442695, %v1313_v20  ;;  %v1053_v20 = vld [vmem:[#allocation5] sm:$0xff] }
 0x4a7   : > { %v1048_v22 = vpop.permute.xlu1 %1047  ;;  %v1446_v24 = vpop.xlane.xlu0 %1445 }
 0x4a8   : > { %v1050_v23 = vsub.f32 %v3515_v41, %v1048_v22  ;;  %v1447_v25 = vmax.f32 %v3566_v21, %v1446_v24 }
 0x4aa   : > { %v1051_v26 = vmul.f32 1.442695, %v1050_v23  ;;  %v1448_v27 = vsub.f32 %v3566_v21, %v1447_v25  ;;  %1526 = vst.msk [vmem:[#allocation4 + $0x18] sm:$0xff] %vm834_vm3, %v1447_v25  ;;  %1453 = vperm.xlu1 %2311, %v1447_v25  }
 0x4ac   : > { %2321 = vpow2.f32 %v1051_v26  ;;  %v1449_v57 = vmul.f32 1.442695, %v1448_v27 }
 0x4ae   : > { %1206 = vrot.lane.b32.xlu1 %v989_v10, %s2882_s24 }
 0x4b2   : > { %1341 = vrot.lane.b32.xlu1 %v989_v10, %s2881_s19  ;;  %s2753_s19 = scalar_lea.vmem %s2752_s14, 256 }
 0x4b3   : > { %p2755_p2 = scmp.lt.s32.totalorder %s2753_s19, %s2747_s1 }
 0x4b5   : > { %p2756_p5 = por %p2755_p2, %p2754_p8 }
 0x4b6   : > { %v2322_v28 = vpop.eup %2321  ;;  %1476 = vrot.lane.b32.xlu1 %v989_v10, %s2883_s12  ;;  %v1043_v10 = vmul.f32 1.442695, %v1042_v3 }
 0x4b7   : > { %v1068_v29 = vpack.c.bf16 %v2322_v28, %v2322_v28  ;;  %v1055_v54 = vsel %vm843_vm2, %v2322_v28, 0.0  ;;  %p2757_p3 = pnand %p2756_p5, %p2750_p7 }
 0x4b9   : > { %2074 = vmatmul.mubr.msk.bf16.vlgmr.msra.gmra.mrb[8].mxu0 %vm843_vm2, %v1068_v29  ;;  %v1197_v29 = vld [vmem:[#allocation3 + $0x8] sm:$0xff] }
 0x4ba   : > { %2085 = vmatprep.mubr.msk.bf16.mxu0 %vm2880_vm0, %v2879_v0 }
 0x519   : > { %v1183_v30 = vpop.permute.xlu0 %1182 }
 0x51a   : > { %v1185_v31 = vsub.f32 %v3531_v48, %v1183_v30 }
 0x51c   : > { %v1186_v32 = vmul.f32 1.442695, %v1185_v31 }
 0x51e   : > { %2323 = vpow2.f32 %v1186_v32 }
 0x521   : > { %v1319_v33 = vpop.permute.xlu1 %1318 }
 0x522   : > { %v1321_v34 = vsub.f32 %v3535_v53, %v1319_v33 }
 0x524   : > { %v1322_v35 = vmul.f32 1.442695, %v1321_v34 }
 0x526   : > { %2325 = vpow2.f32 %v1322_v35 }
 0x528   : > { %v2324_v36 = vpop.eup %2323 }
 0x529   : > { %v1454_v37 = vpop.permute.xlu1 %1453  ;;  %v1191_v38 = vsel %vm843_vm2, %v2324_v36, 0.0  ;;  %v1204_v44 = vpack.c.bf16 %v2324_v36, %v2324_v36 }
 0x52a   : > { %v1456_v39 = vsub.f32 %v3539_v58, %v1454_v37  ;;  %1192 = vadd.xlane.f32.xlu1 %v1191_v38  ;;  %v1333_v37 = vld [vmem:[#allocation3 + $0x10] sm:$0xff] }
 0x52c   : > { %v1457_v40 = vmul.f32 1.442695, %v1456_v39 }
 0x52d   : > { %v1207_v41 = vpop.permute.xlu1 %1206 }
 0x52e   : > { %2327 = vpow2.f32 %v1457_v40  ;;  %v1212_v42 = vsel %vm1072_vm4, %v1207_v41, 0 }
 0x52f   : > { %2084 = vmatpush3.bf16.msra.mxu0 %v1212_v42  ;;  %2329 = vpow2.f32 %v1178_v52 }
 0x530   : > { %v2326_v43 = vpop.eup %2325  ;;  %2095 = vmatprep.subr.bf16.mxu0 %v2879_v0  ;;  %2331 = vpow2.f32 %v1314_v55 }
 0x531   : > { %v1327_v45 = vsel %vm843_vm2, %v2326_v43, 0.0  ;;  %v1342_v46 = vpop.permute.xlu1 %1341  ;;  %v1340_v50 = vpack.c.bf16 %v2326_v43, %v2326_v43  ;;  %2333 = vpow2.f32 %v1449_v57  ;;  %v2320_v57 = vld [vmem:[#allocation23 + $0x8] sm:$0xff]  }
 0x532   : > { %1328 = vadd.xlane.f32.xlu0 %v1327_v45  ;;  %2086 = vmatmul.mubr.msk.bf16.vlgmr.msra.gmra.mrb[12].mxu0 %vm843_vm2, %v1204_v44  ;;  %v1347_v47 = vsel %vm1072_vm4, %v1342_v46, 0  ;;  %2335 = vpow2.f32 %v1043_v10  ;;  %v1468_v45 = vld [vmem:[#allocation3 + $0x18] sm:$0xff] }
 0x533   : > { %2096 = vmatpush3.bf16.msra.mxu0 %v1347_v47  ;;  %2097 = vmatprep.mubr.msk.bf16.mxu0 %vm2880_vm0, %v2879_v0 }
 0x534   : > { %2107 = vmatprep.subr.bf16.mxu0 %v2879_v0 }
 0x535   : > { %v1477_v48 = vpop.permute.xlu1 %1476 }
 0x536   : > { %v1482_v51 = vsel %vm1072_vm4, %v1477_v48, 0 }
 0x538   : > { %v2328_v49 = vpop.eup %2327 }
 0x539   : > { %v1462_v53 = vsel %vm843_vm2, %v2328_v49, 0.0  ;;  %v1475_v56 = vpack.c.bf16 %v2328_v49, %v2328_v49  ;;  %v2330_v58 = vpop.eup %2329 }
 0x53a   : > { %1463 = vadd.xlane.f32.xlu1 %v1462_v53  ;;  %2098 = vmatmul.mubr.msk.bf16.vlgmr.msra.gmra.mrb[16].mxu0 %vm843_vm2, %v1340_v50  ;;  %v2332_v59 = vpop.eup %2331  ;;  %v1190_v7 = vmul.f32 %v2330_v58, %v1189_v6  ;;  %v2319_v53 = vld [vmem:[#allocation23] sm:$0xff]  }
 0x53b   : > { %2108 = vmatpush3.bf16.msra.mxu0 %v1482_v51  ;;  %2109 = vmatprep.mubr.msk.bf16.mxu0 %vm2880_vm0, %v2879_v0  ;;  %v2334_v60 = vpop.eup %2333  ;;  %v1326_v12 = vmul.f32 %v2332_v59, %v1325_v11 }
 0x53c   : > { %v1461_v17 = vmul.f32 %v2334_v60, %v1460_v16  ;;  %v2336_v18 = vpop.eup %2335  ;;  %2114 = vmatpush3.bf16.msra.mxu1 %v2319_v53 }
 0x53d   : > { %v1054_v63 = vmul.f32 %v2336_v18, %v1053_v20  ;;  %2115 = vmatprep.subr.bf16.mxu1 %v2879_v0 }
 0x53e   : > { %1056 = vadd.xlane.f32.xlu1 %v1055_v54 }
 0x540   : > { %2116 = vmatpush3.bf16.msra.mxu1 %v2320_v57 }
 0x542   : > { %2110 = vmatmul.mubr.msk.bf16.vlgmr.msra.gmra.mrb[20].mxu0 %vm843_vm2, %v1475_v56 }
 0x548   : > { %1200 = vperm.xlu0 %2312, %v2330_v58  }
 0x54f   : > { %1336 = vperm.xlu1 %2311, %v2332_v59  }
 0x553   : > { %1471 = vperm.xlu1 %2311, %v2334_v60  }
 0x58c   : > { %v3597_v61 = vpop.f32.mrb[8].mxu0 }
 0x58d   : > { %v2075_v62 = vpop.f32.mrb[9].mxu0 }
 0x58e   : > { %v1113_v1 = vpop.f32.mrb[10].mxu0  ;;  %v1061_v62 = vld [vmem:[#allocation3] sm:$0xff] }
 0x58f   : > { %v2076_v4 = vpop.f32.mrb[11].mxu0 }
 0x5b7   : > { %v1193_v8 = vpop.xlane.xlu1 %1192 }
 0x5b8   : > { %v1194_v9 = vadd.f32 %v1193_v8, %v1190_v7 }
 0x5ba   : > { %1195 = vst.msk [vmem:[#allocation5 + $0x8] sm:$0xff] %vm834_vm3, %v1194_v9 }
 0x5bf   : > { %v1329_v13 = vpop.xlane.xlu0 %1328 }
 0x5c0   : > { %v1330_v14 = vadd.f32 %v1329_v13, %v1326_v12 }
 0x5c1   : > { %v1540_v15 = vld [vmem:[#allocation5 + $0x8] sm:$0xff] }
 0x5c2   : > { %1331 = vst.msk [vmem:[#allocation5 + $0x10] sm:$0xff] %vm834_vm3, %v1330_v14  ;;  %2337 = vrcp.f32 %v1540_v15 }
 0x5c7   : > { %v1464_v19 = vpop.xlane.xlu1 %1463  ;;  %v1201_v30 = vpop.permute.xlu0 %1200 }
 0x5c8   : > { %v1465_v21 = vadd.f32 %v1464_v19, %v1461_v17  ;;  %v1203_v31 = vmul.f32 %v1201_v30, %v1197_v29 }
 0x5c9   : > { %v1549_v22 = vld [vmem:[#allocation5 + $0x10] sm:$0xff] }
 0x5ca   : > { %1466 = vst.msk [vmem:[#allocation5 + $0x18] sm:$0xff] %vm834_vm3, %v1465_v21  ;;  %2339 = vrcp.f32 %v1549_v22 }
 0x5cb   : > { %v1057_v2 = vpop.xlane.xlu1 %1056 }
 0x5cc   : > { %v2338_v3 = vpop.eup %2337  ;;  %v1058_v23 = vadd.f32 %v1057_v2, %v1054_v63 }
 0x5cd   : > { %1544 = vperm.xlu0 %2312, %v2338_v3  }
 0x5ce   : > { %1060 = vst.msk [vmem:[#allocation5] sm:$0xff] %vm834_vm3, %v1058_v23 }
 0x5cf   : > { %v1337_v38 = vpop.permute.xlu1 %1336 }
 0x5d0   : > { %v1339_v39 = vmul.f32 %v1337_v38, %v1333_v37 }
 0x5d1   : > { %v1558_v24 = vld [vmem:[#allocation5 + $0x18] sm:$0xff] }
 0x5d2   : > { %2341 = vrcp.f32 %v1558_v24 }
 0x5d3   : > { %v1472_v46 = vpop.permute.xlu1 %1471 }
 0x5d4   : > { %v2340_v25 = vpop.eup %2339  ;;  %v1474_v47 = vmul.f32 %v1472_v46, %v1468_v45 }
 0x5d5   : > { %1553 = vperm.xlu1 %2311, %v2340_v25   ;;  %v1531_v26 = vld [vmem:[#allocation5] sm:$0xff] }
 0x5d6   : > { %2343 = vrcp.f32 %v1531_v26 }
 0x5d9   : > { %1064 = vperm.xlu1 %2311, %v2336_v18   ;;  %v2003_v18 = vld [vmem:[#allocation24] ss:$0 sm:$0xff] }
 0x5dc   : > { %v2342_v27 = vpop.eup %2341 }
 0x5dd   : > { %1562 = vperm.xlu0 %2312, %v2342_v27  }
 0x5e0   : > { %v2344_v28 = vpop.eup %2343 }
 0x5e1   : > { %1535 = vperm.xlu0 %2312, %v2344_v28  }
 0x605   : > { %v1248_v32 = vpop.f32.mrb[12].mxu0 }
 0x606   : > { %v1254_v33 = vadd.f32 %v1248_v32, %v1203_v31  ;;  %v2087_v34 = vpop.f32.mrb[13].mxu0 }
 0x607   : > { %v1251_v35 = vpop.f32.mrb[14].mxu0 }
 0x608   : > { %1255 = vst.msk [vmem:[#allocation3 + $0x8] sm:$0xff] %vm843_vm2, %v1254_v33  ;;  %v2088_v36 = vpop.f32.mrb[15].mxu0  ;;  %v2008_v33 = vld [vmem:[#allocation27] ss:$0 sm:$0xff] }
 0x60d   : > { %v1383_v40 = vpop.f32.mrb[16].mxu0 }
 0x60e   : > { %v1389_v41 = vadd.f32 %v1383_v40, %v1339_v39  ;;  %v2099_v42 = vpop.f32.mrb[17].mxu0 }
 0x60f   : > { %v1386_v43 = vpop.f32.mrb[18].mxu0  ;;  %v1539_v55 = vld [vmem:[#allocation3 + $0x8] sm:$0xff] }
 0x610   : > { %1390 = vst.msk [vmem:[#allocation3 + $0x10] sm:$0xff] %vm843_vm2, %v1389_v41  ;;  %v2100_v44 = vpop.f32.mrb[19].mxu0 }
 0x615   : > { %v1518_v48 = vpop.f32.mrb[20].mxu0 }
 0x616   : > { %v1524_v49 = vadd.f32 %v1518_v48, %v1474_v47  ;;  %v2111_v50 = vpop.f32.mrb[21].mxu0 }
 0x617   : > { %v1521_v51 = vpop.f32.mrb[22].mxu0  ;;  %v1548_v59 = vld [vmem:[#allocation3 + $0x10] sm:$0xff] }
 0x618   : > { %1525 = vst.msk [vmem:[#allocation3 + $0x18] sm:$0xff] %vm843_vm2, %v1524_v49  ;;  %v2112_v52 = vpop.f32.mrb[23].mxu0 }
 0x61f   : > { %v1557_v8 = vld [vmem:[#allocation3 + $0x18] sm:$0xff] }
 0x64c   : > { %v1545_v54 = vpop.permute.xlu0 %1544 }
 0x64d   : > { %v1547_v56 = vmul.f32 %v1545_v54, %v1539_v55 }
 0x64f   : > { %1567 = vrot.lane.b32.xlu1 %v1547_v56, %s2886_s23 }
 0x654   : > { %v1554_v58 = vpop.permute.xlu1 %1553 }
 0x655   : > { %v1556_v60 = vmul.f32 %v1554_v58, %v1548_v59 }
 0x657   : > { %1571 = vrot.lane.b32.xlu0 %v1556_v60, %s2887_s28 }
 0x658   : > { %v1065_v1 = vpop.permute.xlu1 %1064 }
 0x659   : > { %v1067_v4 = vmul.f32 %v1065_v1, %v1061_v62 }
 0x65b   : > { %v1116_v6 = vadd.f32 %v3597_v61, %v1067_v4 }
 0x65c   : > { %v1563_v7 = vpop.permute.xlu0 %1562 }
 0x65d   : > { %1117 = vst.msk [vmem:[#allocation3] sm:$0xff] %vm843_vm2, %v1116_v6  ;;  %v1565_v9 = vmul.f32 %v1563_v7, %v1557_v8 }
 0x65f   : > { %1575 = vrot.lane.b32.xlu1 %v1565_v9, %s2888_s11 }
 0x660   : > { %v1536_v0 = vpop.permute.xlu0 %1535 }
 0x664   : > { %v1530_v10 = vld [vmem:[#allocation3] sm:$0xff] }
 0x665   : > { %v1538_v12 = vmul.f32 %v1536_v0, %v1530_v10 }
 0x6c1   : > { %v1568_v11 = vpop.permute.xlu1 %1567 }
 0x6c2   : > { %v1578_v14 = vsel %vm843_vm2, %v1538_v12, %v1568_v11 }
 0x6c9   : > { %v1572_v13 = vpop.permute.xlu0 %1571 }
 0x6ca   : > { %v1580_v15 = vsel %vm1579_vm5, %v1578_v14, %v1572_v13 }
 0x6d1   : > { %v1576_v16 = vpop.permute.xlu1 %1575 }
 0x6d2   : > { %v1582_v17 = vsel %vm1581_vm6, %v1580_v15, %v1576_v16 }
 0x6d3   : > { %v1583_v61 = vpack.c.bf16 %v1582_v17, %v1582_v17 }
 0x6d5   : > { %2118 = vmatmul.mubr.msk.bf16.vlgmr.msra.gmra.mrb[20].mxu1 %vm789_vm1, %v1583_v61 }
 0x7a8   : > { %v1644_v19 = vpop.f32.mrb[20].mxu1 }
 0x7a9   : > { %v1645_v20 = vadd.f32 %v2003_v18, %v1644_v19  ;;  %v2119_v21 = vpop.f32.mrb[21].mxu1 }
 0x7aa   : > { %v1647_v22 = vpop.f32.mrb[22].mxu1 }
 0x7ab   : > { %v2120_v63 = vpop.f32.mrb[23].mxu1  ;;  %v1651_v2 = vadd.f32 %v1645_v20, %v3458_v5  ;;  %v2007_v5 = vld [vmem:[#allocation26] ss:$0 sm:$0xff] }
 0x7ad   : > { %v1652_v3 = vsel %vm789_vm1, %v1651_v2, 0.0 }
 0x7ae   : > { %1653 = vadd.xlane.f32.xlu0 %v1652_v3 }
 0x83b   : > { %v1654_v23 = vpop.xlane.xlu0 %1653 }
 0x83c   : > { %v1656_v24 = vmul.f32 0.03125, %v1654_v23 }
 0x83e   : > { %v1657_v25 = vsub.f32 %v1651_v2, %v1656_v24 }
 0x840   : > { %v1658_v26 = vmul.f32 %v1657_v25, %v1657_v25 }
 0x842   : > { %v1659_v27 = vsel %vm789_vm1, %v1658_v26, 0.0 }
 0x843   : > { %1660 = vadd.xlane.f32.xlu1 %v1659_v27 }
 0x8d0   : > { %v1661_v28 = vpop.xlane.xlu1 %1660 }
 0x8d1   : > { %v1662_v29 = vmul.f32 0.03125, %v1661_v28 }
 0x8d3   : > { %v1663_v30 = vadd.f32 1e-05, %v1662_v29 }
 0x8d5   : > { %2345 = vrsqrt.f32 %v1663_v30 }
 0x8df   : > { %v2346_v31 = vpop.eup %2345 }
 0x8e0   : > { %v1665_v32 = vmul.f32 %v2346_v31, %v1657_v25 }
 0x8e2   : > { %v1673_v34 = vmul.f32 %v2007_v5, %v1665_v32 }
 0x8e4   : > { %v1681_v35 = vadd.f32 %v2008_v33, %v1673_v34 }
 0x8e6   : > { %1682 = vst.msk [vmem:[%s756_s5] sm:$0xff] %vm789_vm1, %v1681_v35 }
 0x8e7   : > { %2760 = shalt.err (!%p2757_p3)
}
 0x8e8   : > { %s2761_s7 = scalar_lea.hbm %s3622_s4, 128  ;;  %s2765_s23 = scalar_lea.hbm %s3782_s6, 256 }
 0x8e9   : > { %p2762_p1 = scmp.ne.s32.totalorder %s3622_s4, %s2761_s7  ;;  %p2766_p0 = scmp.lt.u32.totalorder %s3622_s4, %s3782_s6 }
 0x8ea   : > { %p2767_p4 = scmp.lt.u32.totalorder %s2765_s23, %s2761_s7  ;;  %p2769_p11 = scmp.lt.u32.totalorder %s2761_s7, %s3622_s4 }
 0x8eb   : > { %p2763_p9 = pnand %p2762_p1, %p3783_p12 }
 0x8ec   : > { %p2768_p13 = por %p2767_p4, %p2766_p0 }
 0x8ed   : > { %p2764_p6 = pneg %p2763_p9 }
 0x8ee   : > { %p2770_p10 = por %p2769_p11, %p2768_p13 }
 0x8f0   : > { %p2771_p7 = pnand %p2770_p10, %p2764_p6 }
 0x8f2   : > { %2774 = shalt.err (!%p2771_p7)
}
 0x8f3   : > { %2169 = dma.vmem_to_hbm [thread:$0]  (%p3783_p12), %s3624_s9, 128, %s3622_s4, %s1684_s3  }
 0x8f4 PF: > { %s3784_s22 = sld [smem:[#allocation45_spill]]  ;;  %s1710_s20 = sand.u32 1, %s2841_s29  }
 0x8f5   : > { %p3786_p2 = scmp.ge.s32.totalorder %s2861_s18, 2  ;;  %s1711_s5 = scalar_lea.sflag [#allocation8], %s1710_s20 }
 0x8fa   : > { %p3785_p8 = scmp.ne.s32.totalorder %s3784_s22, 0 }
 0x8fc   : > { %p2216_p5 = pnand %p3786_p2, %p3785_p8 }
 0x8fe   : > { %2836 = dma.done.wait (!%p2216_p5), %s1711_s5, 128  }
 0x8ff   : > { %2838 = vsyncadd (!%p2216_p5), %s1711_s5, 4294967168  ;;  %s41_s18 = sadd.s32 1, %s2861_s18   ;;  %s3787_s0 = sld [smem:[#allocation44_spill]] }
 0x900   : > { %p38_p3 = scmp.ge.s32.totalorder %s41_s18, 4   ;;  %s3788_s16 = sld [smem:[#allocation41_spill]] }
 0x901   : > { %s3789_s17 = sld [smem:[#allocation43_spill]]  ;;  %s3790_s29 = smov %s2845_s30 }
 0x902   : > { %s3791_s30 = smov %s2849_s15  ;;  %40 = sbr.rel (!%p38_p3) target bundleno = 29 (0x1d), region = 215 }
 0x905   : > { %s3792_s15 = smov %s3787_s0 }
 0x909   :  { %1716 = vsyncpa [#allocation7], 1 }
 0x90a   :  { %1718 = vsyncpa [#allocation7 + $0x1], 1 }
 0x90b   :  { %1719 = vsyncpa [#allocation10], 1 }
 0x90c   :  { %1721 = vsyncpa [#allocation10 + $0x1], 1 }
 0x90d   :  { %1722 = vsyncpa [#allocation13], 1 }
 0x90e   :  { %1724 = vsyncpa [#allocation13 + $0x1], 1 }
 0x90f   :  { %1725 = vsyncpa [#allocation16], 1 }
 0x910   :  { %1726 = vsyncpa [#allocation19], 1 }
 0x911   :  { %1727 = vsyncpa [#allocation22], 1 }
 0x912   :  { %1728 = vsyncpa [#allocation25], 1 }
 0x913   :  { %1729 = vsyncpa [#allocation28], 1 }
 0x914   :  { %1730 = vsyncpa [#allocation8], 1 }
 0x915   :  { %1732 = vsyncpa [#allocation8 + $0x1], 1 }

</bundles_post_ra>
